<compile_context>
chip_gen: v6e
topology: v6e:2x2x1
jax: 0.10.0
libtpu: 0.0.40
codegen_flags: <defaults>
</compile_context>

<pallas_src>
import functools

import jax
import jax.numpy as jnp
from jax import lax
from jax.experimental import pallas as pl
from jax.experimental.pallas import tpu as pltpu

_SUBLANE = 8
# Tiny at these toy shapes, safely below v7x's 64 MiB physical VMEM.
_VMEM_LIMIT_BYTES = 32 * 1024 * 1024


def _round_up(x, m):
    return (x + m - 1) // m * m


# -----------------------------------------------------------------------------
# Shared traced helper: fused bidirectional LSTM recurrence
# -----------------------------------------------------------------------------
def _bidir_recurrence(x_ref, wih_ref, whh_ref, b_ref, h0_ref, c0_ref, xw_ref,
                      store_step, *, T, Bp):
    """Fused forward+backward LSTM recurrence on 2D (T*Bp, .) layouts.

    x_ref:   (T*Bp, E)   f32
    wih_ref: (E, 8H)     mxu dtype, fused gate columns [i_f f_f o_f i_b f_b o_b g_f g_b]
    whh_ref: (2H, 8H)    mxu dtype, block-diagonal (fwd rows -> fwd cols, bwd -> bwd)
    b_ref:   (1, 8H)     f32
    h0_ref:  (Bp, 2H)    f32  ([h0_f | h0_b])
    c0_ref:  (Bp, 2H)    f32  ([c0_f | c0_b])
    xw_ref:  (T*Bp, 8H)  f32 scratch (hoisted x @ W_ih + b)
    store_step(row_f, row_b, h_f, h_b): persists per-step hidden states.
    """
    H2 = whh_ref.shape[0]            # 2H
    H = H2 // 2
    G = 4 * H2                       # 8H
    mxu_dtype = wih_ref.dtype

    # Hoisted input projection: ONE big MXU matmul + bias, 128-lane-dense stores.
    xw_ref[...] = (jnp.dot(x_ref[...].astype(mxu_dtype), wih_ref[...],
                           preferred_element_type=jnp.float32) + b_ref[...])

    whh = whh_ref[...]

    # Column selector for the fused gate slab (hoisted out of the loop):
    # forward columns are [0, 3H) and [6H, 7H); backward columns the rest.
    col = lax.broadcasted_iota(jnp.int32, (Bp, G), 1)
    fwd_col = (col < 3 * H) | ((col >= 6 * H) & (col < 7 * H))

    def step(t, carry):
        hcat, c_f, c_b = carry
        tb = T - 1 - t
        rf = pl.multiple_of(t * Bp, _SUBLANE)
        rb = pl.multiple_of(tb * Bp, _SUBLANE)
        # One select merges forward (time t) and backward (time T-1-t) x-projections.
        xg = jnp.where(fwd_col, xw_ref[pl.ds(rf, Bp), :], xw_ref[pl.ds(rb, Bp), :])
        # One block-diagonal h-matmul covers both directions.
        g = xg + jnp.dot(hcat.astype(mxu_dtype), whh,
                         preferred_element_type=jnp.float32)
        s = jax.nn.sigmoid(g[:, 0:6 * H])        # one EUP launch for all 6 sigmoid gates
        tg = jnp.tanh(g[:, 6 * H:8 * H])         # one EUP launch for both g-gates
        i_f, f_f, o_f = s[:, 0:H], s[:, H:2 * H], s[:, 2 * H:3 * H]
        i_b, f_b, o_b = s[:, 3 * H:4 * H], s[:, 4 * H:5 * H], s[:, 5 * H:6 * H]
        g_f, g_b = tg[:, 0:H], tg[:, H:2 * H]
        c_f = f_f * c_f + i_f * g_f
        c_b = f_b * c_b + i_b * g_b
        h_f = o_f * jnp.tanh(c_f)
        h_b = o_b * jnp.tanh(c_b)
        store_step(rf, rb, h_f, h_b)
        return jnp.concatenate([h_f, h_b], axis=-1), c_f, c_b

    c0 = c0_ref[...]
    # Partial unroll: keeps fwd/bwd overlap visible to the scheduler without blowing up
    # vreg live ranges at production T.
    lax.fori_loop(0, T, step, (h0_ref[...], c0[:, 0:H], c0[:, H:2 * H]),
                  unroll=min(T, 8))


# -----------------------------------------------------------------------------
# Kernel 1: one fused bidirectional LSTM layer -> (T*Bp, 2H)
# -----------------------------------------------------------------------------
def _bilstm_layer_kernel(x_ref, wih_ref, whh_ref, b_ref, h0_ref, c0_ref,
                         out_ref, xw_ref, *, T, Bp):
    H = whh_ref.shape[0] // 2

    def store(rf, rb, h_f, h_b):
        # Write each direction straight into its lane half of the output.
        out_ref[pl.ds(rf, Bp), 0:H] = h_f
        out_ref[pl.ds(rb, Bp), H:2 * H] = h_b

    _bidir_recurrence(x_ref, wih_ref, whh_ref, b_ref, h0_ref, c0_ref, xw_ref,
                      store, T=T, Bp=Bp)


def bilstm_layer(x, wih, whh_blk, b, h0cat, c0cat, T, Bp):
    H2 = whh_blk.shape[0]
    kernel = functools.partial(_bilstm_layer_kernel, T=T, Bp=Bp)
    return pl.pallas_call(
        kernel,
        out_shape=jax.ShapeDtypeStruct((T * Bp, H2), jnp.float32),
        scratch_shapes=[pltpu.VMEM((T * Bp, 4 * H2), jnp.float32)],   # fused x@W_ih
        compiler_params=pltpu.CompilerParams(vmem_limit_bytes=_VMEM_LIMIT_BYTES),
    )(x, wih, whh_blk, b, h0cat, c0cat)


# -----------------------------------------------------------------------------
# Kernel 2: last bidirectional layer fused with Linear + BatchNorm1d head -> (T*Bp, K)
# -----------------------------------------------------------------------------
def _bilstm_head_kernel(x_ref, wih_ref, whh_ref, b_ref, h0_ref, c0_ref,
                        wh_ref, bh_ref, gamma_ref, beta_ref, mask_ref,
                        out_ref, xw_ref, hseq_ref, *, T, Bp, n_valid, eps):
    H = whh_ref.shape[0] // 2

    def store(rf, rb, h_f, h_b):
        hseq_ref[pl.ds(rf, Bp), 0:H] = h_f
        hseq_ref[pl.ds(rb, Bp), H:2 * H] = h_b

    _bidir_recurrence(x_ref, wih_ref, whh_ref, b_ref, h0_ref, c0_ref, xw_ref,
                      store, T=T, Bp=Bp)

    # hidden2tag Linear: direction "concat" already happened via the store layout.
    feats = (jnp.dot(hseq_ref[...].astype(wh_ref.dtype), wh_ref[...],
                     preferred_element_type=jnp.float32) + bh_ref[...])
    # BatchNorm1d training-mode forward: masked batch stats over the T*B real rows,
    # two-pass (shift-by-mean) biased variance.
    m = mask_ref[...]
    inv_n = 1.0 / float(n_valid)
    mean = jnp.sum(feats * m, axis=0, keepdims=True) * inv_n
    d = (feats - mean) * m
    var = jnp.sum(d * d, axis=0, keepdims=True) * inv_n
    out_ref[...] = (feats - mean) * lax.rsqrt(var + eps) * gamma_ref[...] + beta_ref[...]


def bilstm_layer_head(x, wih, whh_blk, b, h0cat, c0cat, wh, bh, gamma, beta, bn_mask,
                      T, Bp, n_valid, eps=1e-5):
    H2 = whh_blk.shape[0]
    K = wh.shape[1]
    kernel = functools.partial(_bilstm_head_kernel, T=T, Bp=Bp, n_valid=n_valid, eps=eps)
    return pl.pallas_call(
        kernel,
        out_shape=jax.ShapeDtypeStruct((T * Bp, K), jnp.float32),
        scratch_shapes=[pltpu.VMEM((T * Bp, 4 * H2), jnp.float32),   # fused x@W_ih
                        pltpu.VMEM((T * Bp, H2), jnp.float32)],      # [h_f | h_b] sequence
        compiler_params=pltpu.CompilerParams(vmem_limit_bytes=_VMEM_LIMIT_BYTES),
    )(x, wih, whh_blk, b, h0cat, c0cat, wh, bh, gamma, beta, bn_mask)


# -----------------------------------------------------------------------------
# One-time parameter fusion: PyTorch gate order (i, f, g, o) per direction ->
# fused kernel layout [i_f f_f o_f | i_b f_b o_b | g_f g_b], block-diagonal W_hh,
# MXU operands cast to mxu_dtype.  Done ONCE, outside the forward call.
# -----------------------------------------------------------------------------
def _split_gates(w, H):
    return w[..., 0:H], w[..., H:2 * H], w[..., 2 * H:3 * H], w[..., 3 * H:4 * H]


def fuse_lstm_params(params, mxu_dtype=jnp.bfloat16):
    fused = {
        "embedding": params["embedding"],
        "h2t_w": params["h2t_w"].astype(mxu_dtype),
        "h2t_b": params["h2t_b"].reshape(1, -1).astype(jnp.float32),
        "bn_gamma": params["bn_gamma"].reshape(1, -1).astype(jnp.float32),
        "bn_beta": params["bn_beta"].reshape(1, -1).astype(jnp.float32),
        "lstm": [],
    }
    for lp in params["lstm"]:
        H = lp["whh_f"].shape[0]
        i_f, f_f, g_f, o_f = _split_gates(lp["wih_f"], H)
        i_b, f_b, g_b, o_b = _split_gates(lp["wih_b"], H)
        wih = jnp.concatenate([i_f, f_f, o_f, i_b, f_b, o_b, g_f, g_b], axis=-1)
        bi_f, bf_f, bg_f, bo_f = _split_gates(lp["b_f"], H)
        bi_b, bf_b, bg_b, bo_b = _split_gates(lp["b_b"], H)
        b = jnp.concatenate([bi_f, bf_f, bo_f, bi_b, bf_b, bo_b, bg_f, bg_b], axis=-1)
        hi_f, hf_f, hg_f, ho_f = _split_gates(lp["whh_f"], H)
        hi_b, hf_b, hg_b, ho_b = _split_gates(lp["whh_b"], H)
        z = jnp.zeros((H, H), jnp.float32)
        top = jnp.concatenate([hi_f, hf_f, ho_f, z, z, z, hg_f, z], axis=-1)
        bot = jnp.concatenate([z, z, z, hi_b, hf_b, ho_b, z, hg_b], axis=-1)
        whh_blk = jnp.concatenate([top, bot], axis=0)                 # (2H, 8H)
        fused["lstm"].append({
            "wih": wih.astype(mxu_dtype),
            "whh_blk": whh_blk.astype(mxu_dtype),
            "b": b.reshape(1, -1).astype(jnp.float32),
        })
    return fused


# -----------------------------------------------------------------------------
# Full BiLSTM forward (glue in plain JAX, hot loops in the Pallas kernels above)
# -----------------------------------------------------------------------------
def bilstm_forward(fused_params, sentence, hidden):
    """sentence: (B, T) int32 token ids.  Returns (B, T, tagset_size) float32."""
    h0_all, c0_all = hidden                              # (2*num_layers, B, H)
    B, T = sentence.shape
    num_layers = len(fused_params["lstm"])
    Bp = _round_up(B, _SUBLANE)                          # pad batch to the sublane tile

    if Bp != B:
        sentence = jnp.pad(sentence, ((0, Bp - B), (0, 0)))
        h0_all = jnp.pad(h0_all, ((0, 0), (0, Bp - B), (0, 0)))
        c0_all = jnp.pad(c0_all, ((0, 0), (0, Bp - B), (0, 0)))

    # Embedding lookup, time-major, flattened to the 2D (T*Bp, E) kernel layout (glue).
    x = jnp.take(fused_params["embedding"], jnp.transpose(sentence), axis=0)
    x = x.reshape(T * Bp, -1)
    # Dropout -> identity.  # TODO(synk): training-mode stochastic dropout.

    # BatchNorm mask: 1.0 for real batch rows, 0.0 for padding rows.
    bn_mask = (jnp.arange(T * Bp) % Bp < B).astype(jnp.float32).reshape(-1, 1)

    for layer, lp in enumerate(fused_params["lstm"]):
        h0cat = jnp.concatenate([h0_all[2 * layer], h0_all[2 * layer + 1]], axis=-1)
        c0cat = jnp.concatenate([c0_all[2 * layer], c0_all[2 * layer + 1]], axis=-1)
        if layer < num_layers - 1:
            x = bilstm_layer(x, lp["wih"], lp["whh_blk"], lp["b"], h0cat, c0cat, T, Bp)
        else:
            y = bilstm_layer_head(x, lp["wih"], lp["whh_blk"], lp["b"], h0cat, c0cat,
                                  fused_params["h2t_w"], fused_params["h2t_b"],
                                  fused_params["bn_gamma"], fused_params["bn_beta"],
                                  bn_mask, T, Bp, n_valid=T * B)

    y = y.reshape(T, Bp, -1)[:, :B, :]                   # drop batch padding (wrapper)
    return jnp.swapaxes(y, 0, 1)                         # (B, T, K)


# -----------------------------------------------------------------------------
# Deterministic parameter construction (PyTorch layout / gate order i, f, g, o)
# -----------------------------------------------------------------------------
def make_params(key, vocab_size, embedding_dim, hidden_size, num_layers, tagset_size):
    Hd = hidden_size // 2
    keys = iter(jax.random.split(key, 8 + 8 * num_layers))

    def nrm(shape, scale=0.1):
        return scale * jax.random.normal(next(keys), shape, dtype=jnp.float32)

    params = {
        "embedding": nrm((vocab_size, embedding_dim), 1.0),
        "h2t_w": nrm((hidden_size, tagset_size)),        # (in, out) = Linear W^T
        "h2t_b": nrm((tagset_size,)),
        "bn_gamma": jnp.ones((tagset_size,), jnp.float32),
        "bn_beta": jnp.zeros((tagset_size,), jnp.float32),
        "lstm": [],
    }
    for layer in range(num_layers):
        in_size = embedding_dim if layer == 0 else hidden_size
        lp = {}
        for d in ("f", "b"):
            lp[f"wih_{d}"] = nrm((in_size, 4 * Hd))      # (E, 4H) == W_ih^T
            lp[f"whh_{d}"] = nrm((Hd, 4 * Hd))           # (H, 4H) == W_hh^T
            lp[f"b_{d}"] = nrm((4 * Hd,)) + nrm((4 * Hd,))   # b_ih + b_hh
        params["lstm"].append(lp)
    return params


# -----------------------------------------------------------------------------
# Pure-JAX reference (PyTorch gate order, batch-first).  mxu_dtype lets it mirror the
# kernel's matmul-operand precision (f32 or bf16) while the rest stays f32.
# -----------------------------------------------------------------------------
def _ref_lstm_dir(x, wih_t, whh_t, b, h0, c0, mxu_dtype):
    H = whh_t.shape[0]
    wih_c = wih_t.astype(mxu_dtype)
    whh_c = whh_t.astype(mxu_dtype)

    def step(carry, x_t):
        h, c = carry
        g = (jnp.dot(x_t.astype(mxu_dtype), wih_c, preferred_element_type=jnp.float32,
                     precision=lax.Precision.HIGHEST)
             + jnp.dot(h.astype(mxu_dtype), whh_c, preferred_element_type=jnp.float32,
                       precision=lax.Precision.HIGHEST) + b)
        i = jax.nn.sigmoid(g[:, 0 * H:1 * H])
        f = jax.nn.sigmoid(g[:, 1 * H:2 * H])
        gg = jnp.tanh(g[:, 2 * H:3 * H])
        o = jax.nn.sigmoid(g[:, 3 * H:4 * H])
        c = f * c + i * gg
        h = o * jnp.tanh(c)
        return (h, c), h

    _, hs = lax.scan(step, (h0, c0), jnp.swapaxes(x, 0, 1))
    return jnp.swapaxes(hs, 0, 1)


def bilstm_forward_ref(params, sentence, hidden, mxu_dtype=jnp.float32):
    h0_all, c0_all = hidden
    x = jnp.take(params["embedding"], sentence, axis=0)
    for layer, lp in enumerate(params["lstm"]):
        out_f = _ref_lstm_dir(x, lp["wih_f"], lp["whh_f"], lp["b_f"],
                              h0_all[2 * layer], c0_all[2 * layer], mxu_dtype)
        out_b = jnp.flip(_ref_lstm_dir(jnp.flip(x, 1), lp["wih_b"], lp["whh_b"],
                                       lp["b_b"], h0_all[2 * layer + 1],
                                       c0_all[2 * layer + 1], mxu_dtype), 1)
        x = jnp.concatenate([out_f, out_b], axis=-1)
    B, T, Hc = x.shape
    feats = (jnp.dot(x.reshape(B * T, Hc).astype(mxu_dtype),
                     params["h2t_w"].astype(mxu_dtype),
                     preferred_element_type=jnp.float32,
                     precision=lax.Precision.HIGHEST) + params["h2t_b"])
    mean = jnp.mean(feats, axis=0, keepdims=True)
    var = jnp.mean((feats - mean) ** 2, axis=0, keepdims=True)
    y = (feats - mean) * lax.rsqrt(var + 1e-5) * params["bn_gamma"] + params["bn_beta"]
    return y.reshape(B, T, -1)


# -----------------------------------------------------------------------------
if __name__ == "__main__":
    vocab_size = 50
    embedding_dim = 32
    hidden_size = 32          # per-direction hidden = 16  -> fused gate slab = 128 lanes
    tagset_size = 8
    B, T = 2, 8

    root = jax.random.PRNGKey(0)
    k_params, k_tokens, k_h, k_c = jax.random.split(root, 4)
    sentence = jax.random.randint(k_tokens, (B, T), 0, vocab_size, dtype=jnp.int32)

    fwd = jax.jit(bilstm_forward)

    # num_layers=1 exercises the fused layer+head kernel; num_layers=2 also exercises
    # the plain fused-bidirectional layer kernel.  Each is checked with f32 MXU operands
    # (tight tolerance) and bf16 MXU operands (against a matched-precision reference).
    for num_layers in (1, 2):
        params = make_params(jax.random.fold_in(k_params, num_layers),
                             vocab_size, embedding_dim, hidden_size,
                             num_layers, tagset_size)
        # init_hidden(batch_size): randn(2*num_layers, B, hidden_size//2)
        h0 = jax.random.normal(k_h, (2 * num_layers, B, hidden_size // 2), jnp.float32)
        c0 = jax.random.normal(k_c, (2 * num_layers, B, hidden_size // 2), jnp.float32)
        hidden = (h0, c0)

        for mxu_dtype, tol in ((jnp.float32, 5e-3), (jnp.bfloat16, 1e-2)):
            fused = fuse_lstm_params(params, mxu_dtype=mxu_dtype)
            out = jax.block_until_ready(fwd(fused, sentence, hidden))
            assert out.shape == (B, T, tagset_size), out.shape
            ref = jax.block_until_ready(
                bilstm_forward_ref(params, sentence, hidden, mxu_dtype=mxu_dtype))
            err = float(jnp.max(jnp.abs(out - ref)))
            assert err < tol, (num_layers, str(mxu_dtype), err)

    print("KERNEL_OK")
</pallas_src>

<mosaic_0001>
module attributes {stable_mosaic.version = 11 : i64} {
  func.func @_bilstm_head_kernel(%arg0: memref<64x32xf32, #tpu.memory_space<vmem>>, %arg1: memref<32x128xf32, #tpu.memory_space<vmem>>, %arg2: memref<32x128xf32, #tpu.memory_space<vmem>>, %arg3: memref<1x128xf32, #tpu.memory_space<vmem>>, %arg4: memref<8x32xf32, #tpu.memory_space<vmem>>, %arg5: memref<8x32xf32, #tpu.memory_space<vmem>>, %arg6: memref<32x8xf32, #tpu.memory_space<vmem>>, %arg7: memref<1x8xf32, #tpu.memory_space<vmem>>, %arg8: memref<1x8xf32, #tpu.memory_space<vmem>>, %arg9: memref<1x8xf32, #tpu.memory_space<vmem>>, %arg10: memref<64x1xf32, #tpu.memory_space<vmem>>, %arg11: memref<64x8xf32, #tpu.memory_space<vmem>>, %arg12: memref<64x128xf32, #tpu.memory_space<vmem>>, %arg13: memref<64x32xf32, #tpu.memory_space<vmem>>) attributes {dimension_semantics = [], scalar_prefetch = 0 : i64, scratch_operands = 2 : i64, tpu.core_type = #tpu.core_type<tc>} {
    %c0 = arith.constant 0 : index
    %c0_0 = arith.constant 0 : index
    %0 = vector.load %arg0[%c0, %c0_0] : memref<64x32xf32, #tpu.memory_space<vmem>>, vector<64x32xf32>
    %c0_1 = arith.constant 0 : index
    %c0_2 = arith.constant 0 : index
    %1 = vector.load %arg1[%c0_1, %c0_2] : memref<32x128xf32, #tpu.memory_space<vmem>>, vector<32x128xf32>
    %cst = arith.constant dense<0.000000e+00> : vector<64x128xf32>
    %2 = tpu.matmul %0, %1, %cst {dimension_numbers = #tpu.dot_dimension_numbers<[1], [0], [0], [1], [0, 0, 1, 1], [], []>} : vector<64x32xf32>, vector<32x128xf32>, vector<64x128xf32> -> vector<64x128xf32>
    %c0_3 = arith.constant 0 : index
    %c0_4 = arith.constant 0 : index
    %3 = vector.load %arg3[%c0_3, %c0_4] : memref<1x128xf32, #tpu.memory_space<vmem>>, vector<1x128xf32>
    %4 = vector.broadcast %3 : vector<1x128xf32> to vector<64x128xf32>
    %5 = arith.addf %2, %4 : vector<64x128xf32>
    %c0_5 = arith.constant 0 : index
    %c0_6 = arith.constant 0 : index
    %6 = vector.load %arg12[%c0_5, %c0_6] : memref<64x128xf32, #tpu.memory_space<vmem>>, vector<64x128xf32>
    tpu.vector_store %arg12[%c0_5, %c0_6], %5 {strides = array<i32>} : memref<64x128xf32, #tpu.memory_space<vmem>>, vector<64x128xf32>,
    %c0_7 = arith.constant 0 : index
    %c0_8 = arith.constant 0 : index
    %7 = vector.load %arg2[%c0_7, %c0_8] : memref<32x128xf32, #tpu.memory_space<vmem>>, vector<32x128xf32>
    %8 = tpu.iota {dimensions = array<i32: 1>} : vector<8x128xi32>
    %c48_i32 = arith.constant 48 : i32
    %9 = vector.broadcast %c48_i32 : i32 to vector<8x128xi32>
    %10 = arith.cmpi slt, %8, %9 : vector<8x128xi32>
    %c96_i32 = arith.constant 96 : i32
    %11 = vector.broadcast %c96_i32 : i32 to vector<8x128xi32>
    %12 = arith.cmpi sge, %8, %11 : vector<8x128xi32>
    %c112_i32 = arith.constant 112 : i32
    %13 = vector.broadcast %c112_i32 : i32 to vector<8x128xi32>
    %14 = arith.cmpi slt, %8, %13 : vector<8x128xi32>
    %15 = arith.andi %12, %14 : vector<8x128xi1>
    %16 = arith.ori %10, %15 : vector<8x128xi1>
    %c0_9 = arith.constant 0 : index
    %c0_10 = arith.constant 0 : index
    %17 = vector.load %arg5[%c0_9, %c0_10] : memref<8x32xf32, #tpu.memory_space<vmem>>, vector<8x32xf32>
    %c0_11 = arith.constant 0 : index
    %c0_12 = arith.constant 0 : index
    %18 = vector.load %arg4[%c0_11, %c0_12] : memref<8x32xf32, #tpu.memory_space<vmem>>, vector<8x32xf32>
    %19 = vector.extract_strided_slice %17 {offsets = [0, 0], sizes = [8, 16], strides = [1, 1]} : vector<8x32xf32> to vector<8x16xf32>
    %20 = vector.extract_strided_slice %17 {offsets = [0, 16], sizes = [8, 16], strides = [1, 1]} : vector<8x32xf32> to vector<8x16xf32>
    %c0_i32 = arith.constant 0 : i32
    %c7_i32 = arith.constant 7 : i32
    %21 = arith.subi %c7_i32, %c0_i32 : i32
    %c8_i32 = arith.constant 8 : i32
    %22 = arith.muli %c0_i32, %c8_i32 : i32
    %23 = tpu.assume_multiple %22, 8 : i32
    %c8_i32_13 = arith.constant 8 : i32
    %24 = arith.muli %21, %c8_i32_13 : i32
    %25 = tpu.assume_multiple %24, 8 : i32
    %26 = arith.index_cast %23 : i32 to index
    %c0_14 = arith.constant 0 : index
    %27 = vector.load %arg12[%26, %c0_14] : memref<64x128xf32, #tpu.memory_space<vmem>>, vector<8x128xf32>
    %28 = arith.index_cast %25 : i32 to index
    %c0_15 = arith.constant 0 : index
    %29 = vector.load %arg12[%28, %c0_15] : memref<64x128xf32, #tpu.memory_space<vmem>>, vector<8x128xf32>
    %30 = arith.select %16, %27, %29 : vector<8x128xi1>, vector<8x128xf32>
    %cst_16 = arith.constant dense<0.000000e+00> : vector<8x128xf32>
    %31 = tpu.matmul %18, %7, %cst_16 {dimension_numbers = #tpu.dot_dimension_numbers<[1], [0], [0], [1], [0, 0, 1, 1], [], []>} : vector<8x32xf32>, vector<32x128xf32>, vector<8x128xf32> -> vector<8x128xf32>
    %32 = arith.addf %30, %31 : vector<8x128xf32>
    %33 = vector.extract_strided_slice %32 {offsets = [0, 0], sizes = [8, 96], strides = [1, 1]} : vector<8x128xf32> to vector<8x96xf32>
    %34 = arith.negf %33 : vector<8x96xf32>
    %35 = math.exp %34 : vector<8x96xf32>
    %cst_17 = arith.constant 1.000000e+00 : f32
    %36 = vector.broadcast %cst_17 : f32 to vector<8x96xf32>
    %37 = arith.addf %36, %35 : vector<8x96xf32>
    %38 = arith.divf %36, %37 : vector<8x96xf32>
    %39 = vector.extract_strided_slice %32 {offsets = [0, 96], sizes = [8, 32], strides = [1, 1]} : vector<8x128xf32> to vector<8x32xf32>
    %40 = math.tanh %39 : vector<8x32xf32>
    %41 = vector.extract_strided_slice %38 {offsets = [0, 0], sizes = [8, 16], strides = [1, 1]} : vector<8x96xf32> to vector<8x16xf32>
    %42 = vector.extract_strided_slice %38 {offsets = [0, 16], sizes = [8, 16], strides = [1, 1]} : vector<8x96xf32> to vector<8x16xf32>
    %43 = vector.extract_strided_slice %38 {offsets = [0, 32], sizes = [8, 16], strides = [1, 1]} : vector<8x96xf32> to vector<8x16xf32>
    %44 = vector.extract_strided_slice %38 {offsets = [0, 48], sizes = [8, 16], strides = [1, 1]} : vector<8x96xf32> to vector<8x16xf32>
    %45 = vector.extract_strided_slice %38 {offsets = [0, 64], sizes = [8, 16], strides = [1, 1]} : vector<8x96xf32> to vector<8x16xf32>
    %46 = vector.extract_strided_slice %38 {offsets = [0, 80], sizes = [8, 16], strides = [1, 1]} : vector<8x96xf32> to vector<8x16xf32>
    %47 = vector.extract_strided_slice %40 {offsets = [0, 0], sizes = [8, 16], strides = [1, 1]} : vector<8x32xf32> to vector<8x16xf32>
    %48 = vector.extract_strided_slice %40 {offsets = [0, 16], sizes = [8, 16], strides = [1, 1]} : vector<8x32xf32> to vector<8x16xf32>
    %49 = arith.mulf %42, %19 : vector<8x16xf32>
    %50 = arith.mulf %41, %47 : vector<8x16xf32>
    %51 = arith.addf %49, %50 : vector<8x16xf32>
    %52 = arith.mulf %45, %20 : vector<8x16xf32>
    %53 = arith.mulf %44, %48 : vector<8x16xf32>
    %54 = arith.addf %52, %53 : vector<8x16xf32>
    %55 = math.tanh %51 : vector<8x16xf32>
    %56 = arith.mulf %43, %55 : vector<8x16xf32>
    %57 = math.tanh %54 : vector<8x16xf32>
    %58 = arith.mulf %46, %57 : vector<8x16xf32>
    %59 = arith.index_cast %23 : i32 to index
    %c0_18 = arith.constant 0 : index
    %60 = vector.load %arg13[%59, %c0_18] : memref<64x32xf32, #tpu.memory_space<vmem>>, vector<8x16xf32>
    tpu.vector_store %arg13[%59, %c0_18], %56 {strides = array<i32>} : memref<64x32xf32, #tpu.memory_space<vmem>>, vector<8x16xf32>,
    %61 = arith.index_cast %25 : i32 to index
    %c16 = arith.constant 16 : index
    %62 = vector.load %arg13[%61, %c16] : memref<64x32xf32, #tpu.memory_space<vmem>>, vector<8x16xf32>
    tpu.vector_store %arg13[%61, %c16], %58 {strides = array<i32>} : memref<64x32xf32, #tpu.memory_space<vmem>>, vector<8x16xf32>,
    %63 = tpu.concatenate %56, %58 in 1 : vector<8x16xf32>, vector<8x16xf32> -> vector<8x32xf32>
    %c1_i32 = arith.constant 1 : i32
    %c7_i32_19 = arith.constant 7 : i32
    %64 = arith.subi %c7_i32_19, %c1_i32 : i32
    %c8_i32_20 = arith.constant 8 : i32
    %65 = arith.muli %c1_i32, %c8_i32_20 : i32
    %66 = tpu.assume_multiple %65, 8 : i32
    %c8_i32_21 = arith.constant 8 : i32
    %67 = arith.muli %64, %c8_i32_21 : i32
    %68 = tpu.assume_multiple %67, 8 : i32
    %69 = arith.index_cast %66 : i32 to index
    %c0_22 = arith.constant 0 : index
    %70 = vector.load %arg12[%69, %c0_22] : memref<64x128xf32, #tpu.memory_space<vmem>>, vector<8x128xf32>
    %71 = arith.index_cast %68 : i32 to index
    %c0_23 = arith.constant 0 : index
    %72 = vector.load %arg12[%71, %c0_23] : memref<64x128xf32, #tpu.memory_space<vmem>>, vector<8x128xf32>
    %73 = arith.select %16, %70, %72 : vector<8x128xi1>, vector<8x128xf32>
    %cst_24 = arith.constant dense<0.000000e+00> : vector<8x128xf32>
    %74 = tpu.matmul %63, %7, %cst_24 {dimension_numbers = #tpu.dot_dimension_numbers<[1], [0], [0], [1], [0, 0, 1, 1], [], []>} : vector<8x32xf32>, vector<32x128xf32>, vector<8x128xf32> -> vector<8x128xf32>
    %75 = arith.addf %73, %74 : vector<8x128xf32>
    %76 = vector.extract_strided_slice %75 {offsets = [0, 0], sizes = [8, 96], strides = [1, 1]} : vector<8x128xf32> to vector<8x96xf32>
    %77 = arith.negf %76 : vector<8x96xf32>
    %78 = math.exp %77 : vector<8x96xf32>
    %cst_25 = arith.constant 1.000000e+00 : f32
    %79 = vector.broadcast %cst_25 : f32 to vector<8x96xf32>
    %80 = arith.addf %79, %78 : vector<8x96xf32>
    %81 = arith.divf %79, %80 : vector<8x96xf32>
    %82 = vector.extract_strided_slice %75 {offsets = [0, 96], sizes = [8, 32], strides = [1, 1]} : vector<8x128xf32> to vector<8x32xf32>
    %83 = math.tanh %82 : vector<8x32xf32>
    %84 = vector.extract_strided_slice %81 {offsets = [0, 0], sizes = [8, 16], strides = [1, 1]} : vector<8x96xf32> to vector<8x16xf32>
    %85 = vector.extract_strided_slice %81 {offsets = [0, 16], sizes = [8, 16], strides = [1, 1]} : vector<8x96xf32> to vector<8x16xf32>
    %86 = vector.extract_strided_slice %81 {offsets = [0, 32], sizes = [8, 16], strides = [1, 1]} : vector<8x96xf32> to vector<8x16xf32>
    %87 = vector.extract_strided_slice %81 {offsets = [0, 48], sizes = [8, 16], strides = [1, 1]} : vector<8x96xf32> to vector<8x16xf32>
    %88 = vector.extract_strided_slice %81 {offsets = [0, 64], sizes = [8, 16], strides = [1, 1]} : vector<8x96xf32> to vector<8x16xf32>
    %89 = vector.extract_strided_slice %81 {offsets = [0, 80], sizes = [8, 16], strides = [1, 1]} : vector<8x96xf32> to vector<8x16xf32>
    %90 = vector.extract_strided_slice %83 {offsets = [0, 0], sizes = [8, 16], strides = [1, 1]} : vector<8x32xf32> to vector<8x16xf32>
    %91 = vector.extract_strided_slice %83 {offsets = [0, 16], sizes = [8, 16], strides = [1, 1]} : vector<8x32xf32> to vector<8x16xf32>
    %92 = arith.mulf %85, %51 : vector<8x16xf32>
    %93 = arith.mulf %84, %90 : vector<8x16xf32>
    %94 = arith.addf %92, %93 : vector<8x16xf32>
    %95 = arith.mulf %88, %54 : vector<8x16xf32>
    %96 = arith.mulf %87, %91 : vector<8x16xf32>
    %97 = arith.addf %95, %96 : vector<8x16xf32>
    %98 = math.tanh %94 : vector<8x16xf32>
    %99 = arith.mulf %86, %98 : vector<8x16xf32>
    %100 = math.tanh %97 : vector<8x16xf32>
    %101 = arith.mulf %89, %100 : vector<8x16xf32>
    %102 = arith.index_cast %66 : i32 to index
    %c0_26 = arith.constant 0 : index
    %103 = vector.load %arg13[%102, %c0_26] : memref<64x32xf32, #tpu.memory_space<vmem>>, vector<8x16xf32>
    tpu.vector_store %arg13[%102, %c0_26], %99 {strides = array<i32>} : memref<64x32xf32, #tpu.memory_space<vmem>>, vector<8x16xf32>,
    %104 = arith.index_cast %68 : i32 to index
    %c16_27 = arith.constant 16 : index
    %105 = vector.load %arg13[%104, %c16_27] : memref<64x32xf32, #tpu.memory_space<vmem>>, vector<8x16xf32>
    tpu.vector_store %arg13[%104, %c16_27], %101 {strides = array<i32>} : memref<64x32xf32, #tpu.memory_space<vmem>>, vector<8x16xf32>,
    %106 = tpu.concatenate %99, %101 in 1 : vector<8x16xf32>, vector<8x16xf32> -> vector<8x32xf32>
    %c2_i32 = arith.constant 2 : i32
    %c7_i32_28 = arith.constant 7 : i32
    %107 = arith.subi %c7_i32_28, %c2_i32 : i32
    %c8_i32_29 = arith.constant 8 : i32
    %108 = arith.muli %c2_i32, %c8_i32_29 : i32
    %109 = tpu.assume_multiple %108, 8 : i32
    %c8_i32_30 = arith.constant 8 : i32
    %110 = arith.muli %107, %c8_i32_30 : i32
    %111 = tpu.assume_multiple %110, 8 : i32
    %112 = arith.index_cast %109 : i32 to index
    %c0_31 = arith.constant 0 : index
    %113 = vector.load %arg12[%112, %c0_31] : memref<64x128xf32, #tpu.memory_space<vmem>>, vector<8x128xf32>
    %114 = arith.index_cast %111 : i32 to index
    %c0_32 = arith.constant 0 : index
    %115 = vector.load %arg12[%114, %c0_32] : memref<64x128xf32, #tpu.memory_space<vmem>>, vector<8x128xf32>
    %116 = arith.select %16, %113, %115 : vector<8x128xi1>, vector<8x128xf32>
    %cst_33 = arith.constant dense<0.000000e+00> : vector<8x128xf32>
    %117 = tpu.matmul %106, %7, %cst_33 {dimension_numbers = #tpu.dot_dimension_numbers<[1], [0], [0], [1], [0, 0, 1, 1], [], []>} : vector<8x32xf32>, vector<32x128xf32>, vector<8x128xf32> -> vector<8x128xf32>
    %118 = arith.addf %116, %117 : vector<8x128xf32>
    %119 = vector.extract_strided_slice %118 {offsets = [0, 0], sizes = [8, 96], strides = [1, 1]} : vector<8x128xf32> to vector<8x96xf32>
    %120 = arith.negf %119 : vector<8x96xf32>
    %121 = math.exp %120 : vector<8x96xf32>
    %cst_34 = arith.constant 1.000000e+00 : f32
    %122 = vector.broadcast %cst_34 : f32 to vector<8x96xf32>
    %123 = arith.addf %122, %121 : vector<8x96xf32>
    %124 = arith.divf %122, %123 : vector<8x96xf32>
    %125 = vector.extract_strided_slice %118 {offsets = [0, 96], sizes = [8, 32], strides = [1, 1]} : vector<8x128xf32> to vector<8x32xf32>
    %126 = math.tanh %125 : vector<8x32xf32>
    %127 = vector.extract_strided_slice %124 {offsets = [0, 0], sizes = [8, 16], strides = [1, 1]} : vector<8x96xf32> to vector<8x16xf32>
    %128 = vector.extract_strided_slice %124 {offsets = [0, 16], sizes = [8, 16], strides = [1, 1]} : vector<8x96xf32> to vector<8x16xf32>
    %129 = vector.extract_strided_slice %124 {offsets = [0, 32], sizes = [8, 16], strides = [1, 1]} : vector<8x96xf32> to vector<8x16xf32>
    %130 = vector.extract_strided_slice %124 {offsets = [0, 48], sizes = [8, 16], strides = [1, 1]} : vector<8x96xf32> to vector<8x16xf32>
    %131 = vector.extract_strided_slice %124 {offsets = [0, 64], sizes = [8, 16], strides = [1, 1]} : vector<8x96xf32> to vector<8x16xf32>
    %132 = vector.extract_strided_slice %124 {offsets = [0, 80], sizes = [8, 16], strides = [1, 1]} : vector<8x96xf32> to vector<8x16xf32>
    %133 = vector.extract_strided_slice %126 {offsets = [0, 0], sizes = [8, 16], strides = [1, 1]} : vector<8x32xf32> to vector<8x16xf32>
    %134 = vector.extract_strided_slice %126 {offsets = [0, 16], sizes = [8, 16], strides = [1, 1]} : vector<8x32xf32> to vector<8x16xf32>
    %135 = arith.mulf %128, %94 : vector<8x16xf32>
    %136 = arith.mulf %127, %133 : vector<8x16xf32>
    %137 = arith.addf %135, %136 : vector<8x16xf32>
    %138 = arith.mulf %131, %97 : vector<8x16xf32>
    %139 = arith.mulf %130, %134 : vector<8x16xf32>
    %140 = arith.addf %138, %139 : vector<8x16xf32>
    %141 = math.tanh %137 : vector<8x16xf32>
    %142 = arith.mulf %129, %141 : vector<8x16xf32>
    %143 = math.tanh %140 : vector<8x16xf32>
    %144 = arith.mulf %132, %143 : vector<8x16xf32>
    %145 = arith.index_cast %109 : i32 to index
    %c0_35 = arith.constant 0 : index
    %146 = vector.load %arg13[%145, %c0_35] : memref<64x32xf32, #tpu.memory_space<vmem>>, vector<8x16xf32>
    tpu.vector_store %arg13[%145, %c0_35], %142 {strides = array<i32>} : memref<64x32xf32, #tpu.memory_space<vmem>>, vector<8x16xf32>,
    %147 = arith.index_cast %111 : i32 to index
    %c16_36 = arith.constant 16 : index
    %148 = vector.load %arg13[%147, %c16_36] : memref<64x32xf32, #tpu.memory_space<vmem>>, vector<8x16xf32>
    tpu.vector_store %arg13[%147, %c16_36], %144 {strides = array<i32>} : memref<64x32xf32, #tpu.memory_space<vmem>>, vector<8x16xf32>,
    %149 = tpu.concatenate %142, %144 in 1 : vector<8x16xf32>, vector<8x16xf32> -> vector<8x32xf32>
    %c3_i32 = arith.constant 3 : i32
    %c7_i32_37 = arith.constant 7 : i32
    %150 = arith.subi %c7_i32_37, %c3_i32 : i32
    %c8_i32_38 = arith.constant 8 : i32
    %151 = arith.muli %c3_i32, %c8_i32_38 : i32
    %152 = tpu.assume_multiple %151, 8 : i32
    %c8_i32_39 = arith.constant 8 : i32
    %153 = arith.muli %150, %c8_i32_39 : i32
    %154 = tpu.assume_multiple %153, 8 : i32
    %155 = arith.index_cast %152 : i32 to index
    %c0_40 = arith.constant 0 : index
    %156 = vector.load %arg12[%155, %c0_40] : memref<64x128xf32, #tpu.memory_space<vmem>>, vector<8x128xf32>
    %157 = arith.index_cast %154 : i32 to index
    %c0_41 = arith.constant 0 : index
    %158 = vector.load %arg12[%157, %c0_41] : memref<64x128xf32, #tpu.memory_space<vmem>>, vector<8x128xf32>
    %159 = arith.select %16, %156, %158 : vector<8x128xi1>, vector<8x128xf32>
    %cst_42 = arith.constant dense<0.000000e+00> : vector<8x128xf32>
    %160 = tpu.matmul %149, %7, %cst_42 {dimension_numbers = #tpu.dot_dimension_numbers<[1], [0], [0], [1], [0, 0, 1, 1], [], []>} : vector<8x32xf32>, vector<32x128xf32>, vector<8x128xf32> -> vector<8x128xf32>
    %161 = arith.addf %159, %160 : vector<8x128xf32>
    %162 = vector.extract_strided_slice %161 {offsets = [0, 0], sizes = [8, 96], strides = [1, 1]} : vector<8x128xf32> to vector<8x96xf32>
    %163 = arith.negf %162 : vector<8x96xf32>
    %164 = math.exp %163 : vector<8x96xf32>
    %cst_43 = arith.constant 1.000000e+00 : f32
    %165 = vector.broadcast %cst_43 : f32 to vector<8x96xf32>
    %166 = arith.addf %165, %164 : vector<8x96xf32>
    %167 = arith.divf %165, %166 : vector<8x96xf32>
    %168 = vector.extract_strided_slice %161 {offsets = [0, 96], sizes = [8, 32], strides = [1, 1]} : vector<8x128xf32> to vector<8x32xf32>
    %169 = math.tanh %168 : vector<8x32xf32>
    %170 = vector.extract_strided_slice %167 {offsets = [0, 0], sizes = [8, 16], strides = [1, 1]} : vector<8x96xf32> to vector<8x16xf32>
    %171 = vector.extract_strided_slice %167 {offsets = [0, 16], sizes = [8, 16], strides = [1, 1]} : vector<8x96xf32> to vector<8x16xf32>
    %172 = vector.extract_strided_slice %167 {offsets = [0, 32], sizes = [8, 16], strides = [1, 1]} : vector<8x96xf32> to vector<8x16xf32>
    %173 = vector.extract_strided_slice %167 {offsets = [0, 48], sizes = [8, 16], strides = [1, 1]} : vector<8x96xf32> to vector<8x16xf32>
    %174 = vector.extract_strided_slice %167 {offsets = [0, 64], sizes = [8, 16], strides = [1, 1]} : vector<8x96xf32> to vector<8x16xf32>
    %175 = vector.extract_strided_slice %167 {offsets = [0, 80], sizes = [8, 16], strides = [1, 1]} : vector<8x96xf32> to vector<8x16xf32>
    %176 = vector.extract_strided_slice %169 {offsets = [0, 0], sizes = [8, 16], strides = [1, 1]} : vector<8x32xf32> to vector<8x16xf32>
    %177 = vector.extract_strided_slice %169 {offsets = [0, 16], sizes = [8, 16], strides = [1, 1]} : vector<8x32xf32> to vector<8x16xf32>
    %178 = arith.mulf %171, %137 : vector<8x16xf32>
    %179 = arith.mulf %170, %176 : vector<8x16xf32>
    %180 = arith.addf %178, %179 : vector<8x16xf32>
    %181 = arith.mulf %174, %140 : vector<8x16xf32>
    %182 = arith.mulf %173, %177 : vector<8x16xf32>
    %183 = arith.addf %181, %182 : vector<8x16xf32>
    %184 = math.tanh %180 : vector<8x16xf32>
    %185 = arith.mulf %172, %184 : vector<8x16xf32>
    %186 = math.tanh %183 : vector<8x16xf32>
    %187 = arith.mulf %175, %186 : vector<8x16xf32>
    %188 = arith.index_cast %152 : i32 to index
    %c0_44 = arith.constant 0 : index
    %189 = vector.load %arg13[%188, %c0_44] : memref<64x32xf32, #tpu.memory_space<vmem>>, vector<8x16xf32>
    tpu.vector_store %arg13[%188, %c0_44], %185 {strides = array<i32>} : memref<64x32xf32, #tpu.memory_space<vmem>>, vector<8x16xf32>,
    %190 = arith.index_cast %154 : i32 to index
    %c16_45 = arith.constant 16 : index
    %191 = vector.load %arg13[%190, %c16_45] : memref<64x32xf32, #tpu.memory_space<vmem>>, vector<8x16xf32>
    tpu.vector_store %arg13[%190, %c16_45], %187 {strides = array<i32>} : memref<64x32xf32, #tpu.memory_space<vmem>>, vector<8x16xf32>,
    %192 = tpu.concatenate %185, %187 in 1 : vector<8x16xf32>, vector<8x16xf32> -> vector<8x32xf32>
    %c4_i32 = arith.constant 4 : i32
    %c7_i32_46 = arith.constant 7 : i32
    %193 = arith.subi %c7_i32_46, %c4_i32 : i32
    %c8_i32_47 = arith.constant 8 : i32
    %194 = arith.muli %c4_i32, %c8_i32_47 : i32
    %195 = tpu.assume_multiple %194, 8 : i32
    %c8_i32_48 = arith.constant 8 : i32
    %196 = arith.muli %193, %c8_i32_48 : i32
    %197 = tpu.assume_multiple %196, 8 : i32
    %198 = arith.index_cast %195 : i32 to index
    %c0_49 = arith.constant 0 : index
    %199 = vector.load %arg12[%198, %c0_49] : memref<64x128xf32, #tpu.memory_space<vmem>>, vector<8x128xf32>
    %200 = arith.index_cast %197 : i32 to index
    %c0_50 = arith.constant 0 : index
    %201 = vector.load %arg12[%200, %c0_50] : memref<64x128xf32, #tpu.memory_space<vmem>>, vector<8x128xf32>
    %202 = arith.select %16, %199, %201 : vector<8x128xi1>, vector<8x128xf32>
    %cst_51 = arith.constant dense<0.000000e+00> : vector<8x128xf32>
    %203 = tpu.matmul %192, %7, %cst_51 {dimension_numbers = #tpu.dot_dimension_numbers<[1], [0], [0], [1], [0, 0, 1, 1], [], []>} : vector<8x32xf32>, vector<32x128xf32>, vector<8x128xf32> -> vector<8x128xf32>
    %204 = arith.addf %202, %203 : vector<8x128xf32>
    %205 = vector.extract_strided_slice %204 {offsets = [0, 0], sizes = [8, 96], strides = [1, 1]} : vector<8x128xf32> to vector<8x96xf32>
    %206 = arith.negf %205 : vector<8x96xf32>
    %207 = math.exp %206 : vector<8x96xf32>
    %cst_52 = arith.constant 1.000000e+00 : f32
    %208 = vector.broadcast %cst_52 : f32 to vector<8x96xf32>
    %209 = arith.addf %208, %207 : vector<8x96xf32>
    %210 = arith.divf %208, %209 : vector<8x96xf32>
    %211 = vector.extract_strided_slice %204 {offsets = [0, 96], sizes = [8, 32], strides = [1, 1]} : vector<8x128xf32> to vector<8x32xf32>
    %212 = math.tanh %211 : vector<8x32xf32>
    %213 = vector.extract_strided_slice %210 {offsets = [0, 0], sizes = [8, 16], strides = [1, 1]} : vector<8x96xf32> to vector<8x16xf32>
    %214 = vector.extract_strided_slice %210 {offsets = [0, 16], sizes = [8, 16], strides = [1, 1]} : vector<8x96xf32> to vector<8x16xf32>
    %215 = vector.extract_strided_slice %210 {offsets = [0, 32], sizes = [8, 16], strides = [1, 1]} : vector<8x96xf32> to vector<8x16xf32>
    %216 = vector.extract_strided_slice %210 {offsets = [0, 48], sizes = [8, 16], strides = [1, 1]} : vector<8x96xf32> to vector<8x16xf32>
    %217 = vector.extract_strided_slice %210 {offsets = [0, 64], sizes = [8, 16], strides = [1, 1]} : vector<8x96xf32> to vector<8x16xf32>
    %218 = vector.extract_strided_slice %210 {offsets = [0, 80], sizes = [8, 16], strides = [1, 1]} : vector<8x96xf32> to vector<8x16xf32>
    %219 = vector.extract_strided_slice %212 {offsets = [0, 0], sizes = [8, 16], strides = [1, 1]} : vector<8x32xf32> to vector<8x16xf32>
    %220 = vector.extract_strided_slice %212 {offsets = [0, 16], sizes = [8, 16], strides = [1, 1]} : vector<8x32xf32> to vector<8x16xf32>
    %221 = arith.mulf %214, %180 : vector<8x16xf32>
    %222 = arith.mulf %213, %219 : vector<8x16xf32>
    %223 = arith.addf %221, %222 : vector<8x16xf32>
    %224 = arith.mulf %217, %183 : vector<8x16xf32>
    %225 = arith.mulf %216, %220 : vector<8x16xf32>
    %226 = arith.addf %224, %225 : vector<8x16xf32>
    %227 = math.tanh %223 : vector<8x16xf32>
    %228 = arith.mulf %215, %227 : vector<8x16xf32>
    %229 = math.tanh %226 : vector<8x16xf32>
    %230 = arith.mulf %218, %229 : vector<8x16xf32>
    %231 = arith.index_cast %195 : i32 to index
    %c0_53 = arith.constant 0 : index
    %232 = vector.load %arg13[%231, %c0_53] : memref<64x32xf32, #tpu.memory_space<vmem>>, vector<8x16xf32>
    tpu.vector_store %arg13[%231, %c0_53], %228 {strides = array<i32>} : memref<64x32xf32, #tpu.memory_space<vmem>>, vector<8x16xf32>,
    %233 = arith.index_cast %197 : i32 to index
    %c16_54 = arith.constant 16 : index
    %234 = vector.load %arg13[%233, %c16_54] : memref<64x32xf32, #tpu.memory_space<vmem>>, vector<8x16xf32>
    tpu.vector_store %arg13[%233, %c16_54], %230 {strides = array<i32>} : memref<64x32xf32, #tpu.memory_space<vmem>>, vector<8x16xf32>,
    %235 = tpu.concatenate %228, %230 in 1 : vector<8x16xf32>, vector<8x16xf32> -> vector<8x32xf32>
    %c5_i32 = arith.constant 5 : i32
    %c7_i32_55 = arith.constant 7 : i32
    %236 = arith.subi %c7_i32_55, %c5_i32 : i32
    %c8_i32_56 = arith.constant 8 : i32
    %237 = arith.muli %c5_i32, %c8_i32_56 : i32
    %238 = tpu.assume_multiple %237, 8 : i32
    %c8_i32_57 = arith.constant 8 : i32
    %239 = arith.muli %236, %c8_i32_57 : i32
    %240 = tpu.assume_multiple %239, 8 : i32
    %241 = arith.index_cast %238 : i32 to index
    %c0_58 = arith.constant 0 : index
    %242 = vector.load %arg12[%241, %c0_58] : memref<64x128xf32, #tpu.memory_space<vmem>>, vector<8x128xf32>
    %243 = arith.index_cast %240 : i32 to index
    %c0_59 = arith.constant 0 : index
    %244 = vector.load %arg12[%243, %c0_59] : memref<64x128xf32, #tpu.memory_space<vmem>>, vector<8x128xf32>
    %245 = arith.select %16, %242, %244 : vector<8x128xi1>, vector<8x128xf32>
    %cst_60 = arith.constant dense<0.000000e+00> : vector<8x128xf32>
    %246 = tpu.matmul %235, %7, %cst_60 {dimension_numbers = #tpu.dot_dimension_numbers<[1], [0], [0], [1], [0, 0, 1, 1], [], []>} : vector<8x32xf32>, vector<32x128xf32>, vector<8x128xf32> -> vector<8x128xf32>
    %247 = arith.addf %245, %246 : vector<8x128xf32>
    %248 = vector.extract_strided_slice %247 {offsets = [0, 0], sizes = [8, 96], strides = [1, 1]} : vector<8x128xf32> to vector<8x96xf32>
    %249 = arith.negf %248 : vector<8x96xf32>
    %250 = math.exp %249 : vector<8x96xf32>
    %cst_61 = arith.constant 1.000000e+00 : f32
    %251 = vector.broadcast %cst_61 : f32 to vector<8x96xf32>
    %252 = arith.addf %251, %250 : vector<8x96xf32>
    %253 = arith.divf %251, %252 : vector<8x96xf32>
    %254 = vector.extract_strided_slice %247 {offsets = [0, 96], sizes = [8, 32], strides = [1, 1]} : vector<8x128xf32> to vector<8x32xf32>
    %255 = math.tanh %254 : vector<8x32xf32>
    %256 = vector.extract_strided_slice %253 {offsets = [0, 0], sizes = [8, 16], strides = [1, 1]} : vector<8x96xf32> to vector<8x16xf32>
    %257 = vector.extract_strided_slice %253 {offsets = [0, 16], sizes = [8, 16], strides = [1, 1]} : vector<8x96xf32> to vector<8x16xf32>
    %258 = vector.extract_strided_slice %253 {offsets = [0, 32], sizes = [8, 16], strides = [1, 1]} : vector<8x96xf32> to vector<8x16xf32>
    %259 = vector.extract_strided_slice %253 {offsets = [0, 48], sizes = [8, 16], strides = [1, 1]} : vector<8x96xf32> to vector<8x16xf32>
    %260 = vector.extract_strided_slice %253 {offsets = [0, 64], sizes = [8, 16], strides = [1, 1]} : vector<8x96xf32> to vector<8x16xf32>
    %261 = vector.extract_strided_slice %253 {offsets = [0, 80], sizes = [8, 16], strides = [1, 1]} : vector<8x96xf32> to vector<8x16xf32>
    %262 = vector.extract_strided_slice %255 {offsets = [0, 0], sizes = [8, 16], strides = [1, 1]} : vector<8x32xf32> to vector<8x16xf32>
    %263 = vector.extract_strided_slice %255 {offsets = [0, 16], sizes = [8, 16], strides = [1, 1]} : vector<8x32xf32> to vector<8x16xf32>
    %264 = arith.mulf %257, %223 : vector<8x16xf32>
    %265 = arith.mulf %256, %262 : vector<8x16xf32>
    %266 = arith.addf %264, %265 : vector<8x16xf32>
    %267 = arith.mulf %260, %226 : vector<8x16xf32>
    %268 = arith.mulf %259, %263 : vector<8x16xf32>
    %269 = arith.addf %267, %268 : vector<8x16xf32>
    %270 = math.tanh %266 : vector<8x16xf32>
    %271 = arith.mulf %258, %270 : vector<8x16xf32>
    %272 = math.tanh %269 : vector<8x16xf32>
    %273 = arith.mulf %261, %272 : vector<8x16xf32>
    %274 = arith.index_cast %238 : i32 to index
    %c0_62 = arith.constant 0 : index
    %275 = vector.load %arg13[%274, %c0_62] : memref<64x32xf32, #tpu.memory_space<vmem>>, vector<8x16xf32>
    tpu.vector_store %arg13[%274, %c0_62], %271 {strides = array<i32>} : memref<64x32xf32, #tpu.memory_space<vmem>>, vector<8x16xf32>,
    %276 = arith.index_cast %240 : i32 to index
    %c16_63 = arith.constant 16 : index
    %277 = vector.load %arg13[%276, %c16_63] : memref<64x32xf32, #tpu.memory_space<vmem>>, vector<8x16xf32>
    tpu.vector_store %arg13[%276, %c16_63], %273 {strides = array<i32>} : memref<64x32xf32, #tpu.memory_space<vmem>>, vector<8x16xf32>,
    %278 = tpu.concatenate %271, %273 in 1 : vector<8x16xf32>, vector<8x16xf32> -> vector<8x32xf32>
    %c6_i32 = arith.constant 6 : i32
    %c7_i32_64 = arith.constant 7 : i32
    %279 = arith.subi %c7_i32_64, %c6_i32 : i32
    %c8_i32_65 = arith.constant 8 : i32
    %280 = arith.muli %c6_i32, %c8_i32_65 : i32
    %281 = tpu.assume_multiple %280, 8 : i32
    %c8_i32_66 = arith.constant 8 : i32
    %282 = arith.muli %279, %c8_i32_66 : i32
    %283 = tpu.assume_multiple %282, 8 : i32
    %284 = arith.index_cast %281 : i32 to index
    %c0_67 = arith.constant 0 : index
    %285 = vector.load %arg12[%284, %c0_67] : memref<64x128xf32, #tpu.memory_space<vmem>>, vector<8x128xf32>
    %286 = arith.index_cast %283 : i32 to index
    %c0_68 = arith.constant 0 : index
    %287 = vector.load %arg12[%286, %c0_68] : memref<64x128xf32, #tpu.memory_space<vmem>>, vector<8x128xf32>
    %288 = arith.select %16, %285, %287 : vector<8x128xi1>, vector<8x128xf32>
    %cst_69 = arith.constant dense<0.000000e+00> : vector<8x128xf32>
    %289 = tpu.matmul %278, %7, %cst_69 {dimension_numbers = #tpu.dot_dimension_numbers<[1], [0], [0], [1], [0, 0, 1, 1], [], []>} : vector<8x32xf32>, vector<32x128xf32>, vector<8x128xf32> -> vector<8x128xf32>
    %290 = arith.addf %288, %289 : vector<8x128xf32>
    %291 = vector.extract_strided_slice %290 {offsets = [0, 0], sizes = [8, 96], strides = [1, 1]} : vector<8x128xf32> to vector<8x96xf32>
    %292 = arith.negf %291 : vector<8x96xf32>
    %293 = math.exp %292 : vector<8x96xf32>
    %cst_70 = arith.constant 1.000000e+00 : f32
    %294 = vector.broadcast %cst_70 : f32 to vector<8x96xf32>
    %295 = arith.addf %294, %293 : vector<8x96xf32>
    %296 = arith.divf %294, %295 : vector<8x96xf32>
    %297 = vector.extract_strided_slice %290 {offsets = [0, 96], sizes = [8, 32], strides = [1, 1]} : vector<8x128xf32> to vector<8x32xf32>
    %298 = math.tanh %297 : vector<8x32xf32>
    %299 = vector.extract_strided_slice %296 {offsets = [0, 0], sizes = [8, 16], strides = [1, 1]} : vector<8x96xf32> to vector<8x16xf32>
    %300 = vector.extract_strided_slice %296 {offsets = [0, 16], sizes = [8, 16], strides = [1, 1]} : vector<8x96xf32> to vector<8x16xf32>
    %301 = vector.extract_strided_slice %296 {offsets = [0, 32], sizes = [8, 16], strides = [1, 1]} : vector<8x96xf32> to vector<8x16xf32>
    %302 = vector.extract_strided_slice %296 {offsets = [0, 48], sizes = [8, 16], strides = [1, 1]} : vector<8x96xf32> to vector<8x16xf32>
    %303 = vector.extract_strided_slice %296 {offsets = [0, 64], sizes = [8, 16], strides = [1, 1]} : vector<8x96xf32> to vector<8x16xf32>
    %304 = vector.extract_strided_slice %296 {offsets = [0, 80], sizes = [8, 16], strides = [1, 1]} : vector<8x96xf32> to vector<8x16xf32>
    %305 = vector.extract_strided_slice %298 {offsets = [0, 0], sizes = [8, 16], strides = [1, 1]} : vector<8x32xf32> to vector<8x16xf32>
    %306 = vector.extract_strided_slice %298 {offsets = [0, 16], sizes = [8, 16], strides = [1, 1]} : vector<8x32xf32> to vector<8x16xf32>
    %307 = arith.mulf %300, %266 : vector<8x16xf32>
    %308 = arith.mulf %299, %305 : vector<8x16xf32>
    %309 = arith.addf %307, %308 : vector<8x16xf32>
    %310 = arith.mulf %303, %269 : vector<8x16xf32>
    %311 = arith.mulf %302, %306 : vector<8x16xf32>
    %312 = arith.addf %310, %311 : vector<8x16xf32>
    %313 = math.tanh %309 : vector<8x16xf32>
    %314 = arith.mulf %301, %313 : vector<8x16xf32>
    %315 = math.tanh %312 : vector<8x16xf32>
    %316 = arith.mulf %304, %315 : vector<8x16xf32>
    %317 = arith.index_cast %281 : i32 to index
    %c0_71 = arith.constant 0 : index
    %318 = vector.load %arg13[%317, %c0_71] : memref<64x32xf32, #tpu.memory_space<vmem>>, vector<8x16xf32>
    tpu.vector_store %arg13[%317, %c0_71], %314 {strides = array<i32>} : memref<64x32xf32, #tpu.memory_space<vmem>>, vector<8x16xf32>,
    %319 = arith.index_cast %283 : i32 to index
    %c16_72 = arith.constant 16 : index
    %320 = vector.load %arg13[%319, %c16_72] : memref<64x32xf32, #tpu.memory_space<vmem>>, vector<8x16xf32>
    tpu.vector_store %arg13[%319, %c16_72], %316 {strides = array<i32>} : memref<64x32xf32, #tpu.memory_space<vmem>>, vector<8x16xf32>,
    %321 = tpu.concatenate %314, %316 in 1 : vector<8x16xf32>, vector<8x16xf32> -> vector<8x32xf32>
    %c7_i32_73 = arith.constant 7 : i32
    %c7_i32_74 = arith.constant 7 : i32
    %322 = arith.subi %c7_i32_74, %c7_i32_73 : i32
    %c8_i32_75 = arith.constant 8 : i32
    %323 = arith.muli %c7_i32_73, %c8_i32_75 : i32
    %324 = tpu.assume_multiple %323, 8 : i32
    %c8_i32_76 = arith.constant 8 : i32
    %325 = arith.muli %322, %c8_i32_76 : i32
    %326 = tpu.assume_multiple %325, 8 : i32
    %327 = arith.index_cast %324 : i32 to index
    %c0_77 = arith.constant 0 : index
    %328 = vector.load %arg12[%327, %c0_77] : memref<64x128xf32, #tpu.memory_space<vmem>>, vector<8x128xf32>
    %329 = arith.index_cast %326 : i32 to index
    %c0_78 = arith.constant 0 : index
    %330 = vector.load %arg12[%329, %c0_78] : memref<64x128xf32, #tpu.memory_space<vmem>>, vector<8x128xf32>
    %331 = arith.select %16, %328, %330 : vector<8x128xi1>, vector<8x128xf32>
    %cst_79 = arith.constant dense<0.000000e+00> : vector<8x128xf32>
    %332 = tpu.matmul %321, %7, %cst_79 {dimension_numbers = #tpu.dot_dimension_numbers<[1], [0], [0], [1], [0, 0, 1, 1], [], []>} : vector<8x32xf32>, vector<32x128xf32>, vector<8x128xf32> -> vector<8x128xf32>
    %333 = arith.addf %331, %332 : vector<8x128xf32>
    %334 = vector.extract_strided_slice %333 {offsets = [0, 0], sizes = [8, 96], strides = [1, 1]} : vector<8x128xf32> to vector<8x96xf32>
    %335 = arith.negf %334 : vector<8x96xf32>
    %336 = math.exp %335 : vector<8x96xf32>
    %cst_80 = arith.constant 1.000000e+00 : f32
    %337 = vector.broadcast %cst_80 : f32 to vector<8x96xf32>
    %338 = arith.addf %337, %336 : vector<8x96xf32>
    %339 = arith.divf %337, %338 : vector<8x96xf32>
    %340 = vector.extract_strided_slice %333 {offsets = [0, 96], sizes = [8, 32], strides = [1, 1]} : vector<8x128xf32> to vector<8x32xf32>
    %341 = math.tanh %340 : vector<8x32xf32>
    %342 = vector.extract_strided_slice %339 {offsets = [0, 0], sizes = [8, 16], strides = [1, 1]} : vector<8x96xf32> to vector<8x16xf32>
    %343 = vector.extract_strided_slice %339 {offsets = [0, 16], sizes = [8, 16], strides = [1, 1]} : vector<8x96xf32> to vector<8x16xf32>
    %344 = vector.extract_strided_slice %339 {offsets = [0, 32], sizes = [8, 16], strides = [1, 1]} : vector<8x96xf32> to vector<8x16xf32>
    %345 = vector.extract_strided_slice %339 {offsets = [0, 48], sizes = [8, 16], strides = [1, 1]} : vector<8x96xf32> to vector<8x16xf32>
    %346 = vector.extract_strided_slice %339 {offsets = [0, 64], sizes = [8, 16], strides = [1, 1]} : vector<8x96xf32> to vector<8x16xf32>
    %347 = vector.extract_strided_slice %339 {offsets = [0, 80], sizes = [8, 16], strides = [1, 1]} : vector<8x96xf32> to vector<8x16xf32>
    %348 = vector.extract_strided_slice %341 {offsets = [0, 0], sizes = [8, 16], strides = [1, 1]} : vector<8x32xf32> to vector<8x16xf32>
    %349 = vector.extract_strided_slice %341 {offsets = [0, 16], sizes = [8, 16], strides = [1, 1]} : vector<8x32xf32> to vector<8x16xf32>
    %350 = arith.mulf %343, %309 : vector<8x16xf32>
    %351 = arith.mulf %342, %348 : vector<8x16xf32>
    %352 = arith.addf %350, %351 : vector<8x16xf32>
    %353 = arith.mulf %346, %312 : vector<8x16xf32>
    %354 = arith.mulf %345, %349 : vector<8x16xf32>
    %355 = arith.addf %353, %354 : vector<8x16xf32>
    %356 = math.tanh %352 : vector<8x16xf32>
    %357 = arith.mulf %344, %356 : vector<8x16xf32>
    %358 = math.tanh %355 : vector<8x16xf32>
    %359 = arith.mulf %347, %358 : vector<8x16xf32>
    %360 = arith.index_cast %324 : i32 to index
    %c0_81 = arith.constant 0 : index
    %361 = vector.load %arg13[%360, %c0_81] : memref<64x32xf32, #tpu.memory_space<vmem>>, vector<8x16xf32>
    tpu.vector_store %arg13[%360, %c0_81], %357 {strides = array<i32>} : memref<64x32xf32, #tpu.memory_space<vmem>>, vector<8x16xf32>,
    %362 = arith.index_cast %326 : i32 to index
    %c16_82 = arith.constant 16 : index
    %363 = vector.load %arg13[%362, %c16_82] : memref<64x32xf32, #tpu.memory_space<vmem>>, vector<8x16xf32>
    tpu.vector_store %arg13[%362, %c16_82], %359 {strides = array<i32>} : memref<64x32xf32, #tpu.memory_space<vmem>>, vector<8x16xf32>,
    %364 = tpu.concatenate %357, %359 in 1 : vector<8x16xf32>, vector<8x16xf32> -> vector<8x32xf32>
    %c8_i32_83 = arith.constant 8 : i32
    %c0_84 = arith.constant 0 : index
    %c0_85 = arith.constant 0 : index
    %365 = vector.load %arg13[%c0_84, %c0_85] : memref<64x32xf32, #tpu.memory_space<vmem>>, vector<64x32xf32>
    %c0_86 = arith.constant 0 : index
    %c0_87 = arith.constant 0 : index
    %366 = vector.load %arg6[%c0_86, %c0_87] : memref<32x8xf32, #tpu.memory_space<vmem>>, vector<32x8xf32>
    %cst_88 = arith.constant dense<0.000000e+00> : vector<64x8xf32>
    %367 = tpu.matmul %365, %366, %cst_88 {dimension_numbers = #tpu.dot_dimension_numbers<[1], [0], [0], [1], [0, 0, 1, 1], [], []>} : vector<64x32xf32>, vector<32x8xf32>, vector<64x8xf32> -> vector<64x8xf32>
    %c0_89 = arith.constant 0 : index
    %c0_90 = arith.constant 0 : index
    %368 = vector.load %arg7[%c0_89, %c0_90] : memref<1x8xf32, #tpu.memory_space<vmem>>, vector<1x8xf32>
    %369 = vector.broadcast %368 : vector<1x8xf32> to vector<64x8xf32>
    %370 = arith.addf %367, %369 : vector<64x8xf32>
    %c0_91 = arith.constant 0 : index
    %c0_92 = arith.constant 0 : index
    %371 = vector.load %arg10[%c0_91, %c0_92] : memref<64x1xf32, #tpu.memory_space<vmem>>, vector<64x1xf32>
    %372 = vector.broadcast %371 : vector<64x1xf32> to vector<64x8xf32>
    %373 = arith.mulf %370, %372 : vector<64x8xf32>
    %cst_93 = arith.constant dense<0.000000e+00> : vector<8xf32>
    %374 = vector.multi_reduction <add>, %373, %cst_93 [0] : vector<64x8xf32> to vector<8xf32>
    %375 = vector.shape_cast %374 : vector<8xf32> to vector<1x8xf32>
    %cst_94 = arith.constant 6.250000e-02 : f32
    %376 = vector.broadcast %cst_94 : f32 to vector<1x8xf32>
    %377 = arith.mulf %375, %376 : vector<1x8xf32>
    %378 = vector.broadcast %377 : vector<1x8xf32> to vector<64x8xf32>
    %379 = arith.subf %370, %378 : vector<64x8xf32>
    %380 = vector.broadcast %371 : vector<64x1xf32> to vector<64x8xf32>
    %381 = arith.mulf %379, %380 : vector<64x8xf32>
    %382 = arith.mulf %381, %381 : vector<64x8xf32>
    %cst_95 = arith.constant dense<0.000000e+00> : vector<8xf32>
    %383 = vector.multi_reduction <add>, %382, %cst_95 [0] : vector<64x8xf32> to vector<8xf32>
    %384 = vector.shape_cast %383 : vector<8xf32> to vector<1x8xf32>
    %cst_96 = arith.constant 6.250000e-02 : f32
    %385 = vector.broadcast %cst_96 : f32 to vector<1x8xf32>
    %386 = arith.mulf %384, %385 : vector<1x8xf32>
    %387 = vector.broadcast %377 : vector<1x8xf32> to vector<64x8xf32>
    %388 = arith.subf %370, %387 : vector<64x8xf32>
    %cst_97 = arith.constant 9.99999974E-6 : f32
    %389 = vector.broadcast %cst_97 : f32 to vector<1x8xf32>
    %390 = arith.addf %386, %389 : vector<1x8xf32>
    %391 = math.rsqrt %390 : vector<1x8xf32>
    %392 = vector.broadcast %391 : vector<1x8xf32> to vector<64x8xf32>
    %393 = arith.mulf %388, %392 : vector<64x8xf32>
    %c0_98 = arith.constant 0 : index
    %c0_99 = arith.constant 0 : index
    %394 = vector.load %arg8[%c0_98, %c0_99] : memref<1x8xf32, #tpu.memory_space<vmem>>, vector<1x8xf32>
    %395 = vector.broadcast %394 : vector<1x8xf32> to vector<64x8xf32>
    %396 = arith.mulf %393, %395 : vector<64x8xf32>
    %c0_100 = arith.constant 0 : index
    %c0_101 = arith.constant 0 : index
    %397 = vector.load %arg9[%c0_100, %c0_101] : memref<1x8xf32, #tpu.memory_space<vmem>>, vector<1x8xf32>
    %398 = vector.broadcast %397 : vector<1x8xf32> to vector<64x8xf32>
    %399 = arith.addf %396, %398 : vector<64x8xf32>
    %c0_102 = arith.constant 0 : index
    %c0_103 = arith.constant 0 : index
    %400 = vector.load %arg11[%c0_102, %c0_103] : memref<64x8xf32, #tpu.memory_space<vmem>>, vector<64x8xf32>
    tpu.vector_store %arg11[%c0_102, %c0_103], %399 {strides = array<i32>} : memref<64x8xf32, #tpu.memory_space<vmem>>, vector<64x8xf32>,
    return
  }
}

</mosaic_0001>

<bundles_post_ra>
// kernel: bilstm_forward.1
= control target key start
LH: loop header
LB: loop body
LE: loop exit
PB: predicated region body
PF: predicated region fallthrough
CT: control target
= control target key end

     0   :  { %vm57_vm0 = vcmask 261120   ;;  %v1907_v12 = vmov 0.0   ;;  %s1908_s28 = smov 16   ;;  %vm1909_vm1 = vmmov 0   ;;  %s1910_s12 = smov 48   ;;  %v199_v19 = vlaneseq  ;;  %s2411_s1 = inlined_call_operand.vmem [shape: f32[32,128], index: 1, kind: input, shape index: {}]   ;;  %s2412_s0 = inlined_call_operand.vmem [shape: f32[64,32], index: 0, kind: input, shape index: {}]   ;;  %s2413_s2 = inlined_call_operand.vmem [shape: f32[32,128], index: 2, kind: input, shape index: {}]   ;;  %s2414_s5 = inlined_call_operand.vmem [shape: f32[8,32], index: 5, kind: input, shape index: {}]   ;;  %s2415_s4 = inlined_call_operand.vmem [shape: f32[8,32], index: 4, kind: input, shape index: {}]   ;;  %s2416_s3 = inlined_call_operand.vmem [shape: f32[1,128], index: 3, kind: input, shape index: {}]   ;;  %s2417_s6 = inlined_call_operand.vmem [shape: f32[32,8], index: 6, kind: input, shape index: {}]   ;;  %s2418_s10 = inlined_call_operand.vmem [shape: f32[64,1], index: 10, kind: input, shape index: {}]   ;;  %s2419_s7 = inlined_call_operand.vmem [shape: f32[1,8], index: 7, kind: input, shape index: {}]   ;;  %s2420_s8 = inlined_call_operand.vmem [shape: f32[1,8], index: 8, kind: input, shape index: {}]   ;;  %s2421_s9 = inlined_call_operand.vmem [shape: f32[1,8], index: 9, kind: input, shape index: {}]   ;;  %s2422_s11 = inlined_call_operand.vmem [shape: f32[64,8], index: 11, kind: output, shape index: {}]  }
   0x1   :  { %v49_v0 = vld [vmem:[%s2411_s1 + $0x18] sm:$0xff]  ;;  %v48_v1 = vld [vmem:[%s2411_s1 + $0x10] sm:$0xff]  ;;  %v47_v2 = vld [vmem:[%s2411_s1 + $0x8] sm:$0xff]  ;;  %s1912_s13 = smov 64   ;;  %s1913_s14 = smov 96   ;;  %vm337_vm7 = vcmask 130048  }
   0x2   :  { %1679 = vmatprep.subr.mxu0 %v49_v0  ;;  %1807 = vmatprep.subr.mxu1 %v49_v0  ;;  %v46_v3 = vld [vmem:[%s2411_s1] sm:$0xff]  ;;  %v39_v6 = vld [vmem:[%s2412_s0 + $0x8] sm:$0xff]  ;;  %v40_v8 = vld [vmem:[%s2412_s0 + $0x10] sm:$0xff]  ;;  %v200_v20 = vand.u32 127, %v199_v19  ;;  %vm344_vm8 = vcmask 261248   ;;  %vm1458_vm9 = vcmask 64512  }
   0x3   :  { %1680 = vmatpush3.msra.mxu0 %v49_v0  ;;  %1811 = vmatpush3.msra.mxu1 %v49_v0  ;;  %v38_v4 = vld [vmem:[%s2412_s0] sm:$0xff]  ;;  %v43_v7 = vld [vmem:[%s2412_s0 + $0x28] sm:$0xff]  ;;  %v2007_v9 = vld [vmem:[%s2413_s2 + $0x18] sm:$0xff] }
   0x4   :  { %1681 = vmatprep.subr.mxu0 %v48_v1  ;;  %1808 = vmatprep.subr.mxu1 %v48_v1  ;;  %v42_v5 = vld [vmem:[%s2412_s0 + $0x20] sm:$0xff]  ;;  %v44_v10 = vld [vmem:[%s2412_s0 + $0x30] sm:$0xff]  ;;  %v41_v14 = vld [vmem:[%s2412_s0 + $0x18] sm:$0xff]  ;;  %vm202_vm2 = vcmp.ge.s32.totalorder %v200_v20, 96  ;;  %vm203_vm3 = vcmp.lt.s32.totalorder %v200_v20, 112  ;;  %vm201_vm4 = vcmp.lt.s32.totalorder %v200_v20, 48 }
   0x5   :  { %1682 = vmatpush3.msra.mxu0 %v48_v1  ;;  %1812 = vmatpush3.msra.mxu1 %v48_v1  ;;  %v206_v11 = vld [vmem:[%s2414_s5] sm:$0xff]  ;;  %v2022_v13 = vld [vmem:[%s2413_s2 + $0x10] sm:$0xff]  ;;  %v45_v15 = vld [vmem:[%s2412_s0 + $0x38] sm:$0xff] }
   0x6   :  { %1683 = vmatprep.subr.mxu0 %v47_v2  ;;  %1809 = vmatprep.subr.mxu1 %v47_v2  ;;  %v2036_v16 = vld [vmem:[%s2413_s2 + $0x8] sm:$0xff]  ;;  %v2046_v17 = vld [vmem:[%s2413_s2] sm:$0xff]  ;;  %vm204_vm5 = vmand %vm202_vm2, %vm203_vm3 }
   0x7   :  { %1684 = vmatpush3.msra.mxu0 %v47_v2  ;;  %1813 = vmatpush3.msra.mxu1 %v47_v2  ;;  %v207_v18 = vld [vmem:[%s2415_s4] sm:$0xff]  ;;  %vm2090_vm6 = vmor %vm201_vm4, %vm204_vm5 }
   0x8   :  { %1685 = vmatprep.subr.mxu0 %v46_v3  ;;  %1810 = vmatprep.subr.mxu1 %v46_v3  ;;  %v1579_v21 = vld [vmem:[%s2416_s3] ss:$0 sm:$0xff]  ;;  %s1911_s3 = smov 32  }
   0x9   :  { %1686 = vmatpush3.msra.mxu0 %v46_v3  ;;  %1814 = vmatpush3.msra.mxu1 %v46_v3 }
   0xa   :  { %1687 = vmatprep.mubr.msk.f32.mxu0 %vm57_vm0, %v38_v4  ;;  %1693 = vmatprep.mubr.msk.f32.mxu1 %vm57_vm0, %v42_v5 }
   0xb   :  { %1688 = vmatmul.mubr.msk.f32.vlgmr.msra.gmra.mxu0 %vm57_vm0, %v39_v6  ;;  %1694 = vmatmul.mubr.msk.f32.vlgmr.msra.gmra.mxu1 %vm57_vm0, %v43_v7 }
   0xc   :  { %1699 = vmatprep.subr.mxu1 %v1907_v12  ;;  %1690 = vmatprep.mubr.msk.f32.mxu0 %vm57_vm0, %v40_v8 }
   0xd   :  { %1700 = vmatpush3.msra.mxu1 %v2007_v9  ;;  %1696 = vmatprep.mubr.msk.f32.mxu1 %vm57_vm0, %v44_v10 }
   0xe   :  { %1701 = vmatprep.subr.mxu1 %v1907_v12  ;;  %294 = vrot.lane.b32.xlu1 %v206_v11, %s1908_s28 }
   0xf   :  { %1702 = vmatpush3.msra.mxu1 %v2022_v13  ;;  %1691 = vmatmul.mubr.msk.f32.gmra.mxu0 %vm57_vm0, %v41_v14 }
  0x10   :  { %1697 = vmatmul.mubr.msk.f32.gmra.mxu1 %vm57_vm0, %v45_v15  ;;  %1703 = vmatprep.subr.mxu1 %v1907_v12 }
  0x11   :  { %1704 = vmatpush3.msra.mxu1 %v2036_v16  ;;  %1707 = vmatprep.mubr.msk.f32.mxu1 %vm1909_vm1, %v1907_v12 }
  0x12   :  { %1705 = vmatprep.subr.mxu1 %v1907_v12  ;;  %308 = vrot.lane.b32.xlu1 %v206_v11, %s1910_s12 }
  0x13   :  { %1706 = vmatpush3.msra.mxu1 %v2046_v17  ;;  %1721 = vmatprep.subr.mxu0 %v1907_v12 }
  0x14   :  { %1708 = vmatmul.mubr.msk.f32.vlgmr.msra.gmra.mxu1 %vm57_vm0, %v207_v18  ;;  %1710 = vmatprep.subr.mxu1 %v1907_v12 }
  0x15   :  { %1711 = vmatpush3.msra.mxu1 %v2007_v9  ;;  %1718 = vmatprep.mubr.msk.f32.mxu1 %vm1909_vm1, %v1907_v12 }
  0x16   :  { %1712 = vmatprep.subr.mxu1 %v1907_v12  ;;  %1722 = vmatpush3.msra.mxu0 %v2007_v9 }
  0x17   :  { %1713 = vmatpush3.msra.mxu1 %v2022_v13  ;;  %1723 = vmatprep.subr.mxu0 %v1907_v12 }
  0x18   :  { %1714 = vmatprep.subr.mxu1 %v1907_v12  ;;  %1724 = vmatpush3.msra.mxu0 %v2022_v13 }
  0x19   :  { %1715 = vmatpush3.msra.mxu1 %v2036_v16  ;;  %1725 = vmatprep.subr.mxu0 %v1907_v12 }
  0x1a   :  { %1716 = vmatprep.subr.mxu1 %v1907_v12  ;;  %1726 = vmatpush3.msra.mxu0 %v2036_v16 }
  0x1b   :  { %1717 = vmatpush3.msra.mxu1 %v2046_v17  ;;  %1727 = vmatprep.subr.mxu0 %v1907_v12 }
  0x1c   :  { %1728 = vmatpush3.msra.mxu0 %v2046_v17  ;;  %1729 = vmatprep.mubr.msk.f32.mxu0 %vm1909_vm1, %v1907_v12 }
  0x1d   :  { %1732 = vmatprep.subr.mxu1 %v1907_v12  ;;  %1743 = vmatprep.subr.mxu0 %v1907_v12 }
  0x80   :  { %v295_v59 = vpop.permute.xlu1 %294 }
  0x84   :  { %v309_v61 = vpop.permute.xlu1 %308 }
  0xcb   :  { %v1689_v22 = vpop.f32.mrf.mxu0  ;;  %v1695_v23 = vpop.f32.mrf.mxu1 }
  0xcc   :  { %v2082_v24 = vadd.f32 %v1689_v22, %v1579_v21  ;;  %v2084_v25 = vadd.f32 %v1695_v23, %v1579_v21 }
  0xcd   :  { %v148_v26 = vpop.f32.mrf.mxu0  ;;  %v168_v27 = vpop.f32.mrf.mxu1 }
  0xce   :  { %v2086_v28 = vadd.f32 %v1579_v21, %v168_v27  ;;  %v2088_v29 = vadd.f32 %v1579_v21, %v148_v26 }
  0xcf   :  { %v1692_v30 = vpop.f32.mrf.mxu0 }
  0xd0   :  { %v2094_v32 = vadd.f32 %v1692_v30, %v1579_v21  ;;  %v1698_v33 = vpop.f32.mrf.mxu1 }
  0xd1   :  { %v2096_v34 = vadd.f32 %v1698_v33, %v1579_v21  ;;  %v158_v35 = vpop.f32.mrf.mxu0 }
  0xd2   :  { %v2098_v36 = vadd.f32 %v1579_v21, %v158_v35  ;;  %v178_v37 = vpop.f32.mrf.mxu1  ;;  %v615_v38 = vsel %vm2090_vm6, %v2094_v32, %v2086_v28  ;;  %v745_v39 = vsel %vm2090_vm6, %v2086_v28, %v2094_v32 }
  0xd3   :  { %v2108_v40 = vadd.f32 %v1579_v21, %v178_v37  ;;  %v211_v41 = vsel %vm2090_vm6, %v2088_v29, %v2096_v34  ;;  %v1129_v42 = vsel %vm2090_vm6, %v2096_v34, %v2088_v29 }
  0xd4   :  { %v281_v43 = vpop.f32.mrf.mxu1  ;;  %v483_v44 = vsel %vm2090_vm6, %v2098_v36, %v2084_v25  ;;  %v873_v45 = vsel %vm2090_vm6, %v2084_v25, %v2098_v36 }
  0xd5   :  { %v285_v46 = vadd.f32 %v281_v43, %v211_v41  ;;  %v351_v47 = vsel %vm2090_vm6, %v2082_v24, %v2108_v40  ;;  %v1001_v48 = vsel %vm2090_vm6, %v2108_v40, %v2082_v24 }
  0xd6   :  { %v1709_v49 = vpop.f32.mrf.mxu1 }
  0xd7   :  { %1825 = vtanh.f32 %v285_v46  ;;  %v1589_v51 = vmul.f32 -1.442695, %v285_v46 }
  0xd9   :  { %1827 = vpow2.f32 %v1589_v51 }
  0xe4   :  { %v1826_v50 = vpop.eup %1825 }
  0xe5   :  { %299 = vrot.lane.b32.xlu0 %v1826_v50, %s1911_s3 }
  0xe6   :  { %v1828_v52 = vpop.eup %1827 }
  0xe7   :  { %v289_v53 = vadd.f32 1.0, %v1828_v52 }
  0xe9   :  { %312 = vrot.lane.b32.xlu0 %v1826_v50, %s1912_s13  ;;  %1829 = vrcp.f32 %v289_v53 }
  0xf6   :  { %v1830_v54 = vpop.eup %1829 }
  0xf7   :  { %v297_v60 = vmul.f32 %v1830_v54, %v295_v59  ;;  %v311_v0 = vmul.f32 %v1830_v54, %v309_v61 }
 0x157   :  { %v300_v55 = vpop.permute.xlu0 %299 }
 0x158   :  { %v302_v56 = vmul.f32 %v1830_v54, %v300_v55 }
 0x15a   :  { %304 = vrot.lane.b32.xlu0 %v302_v56, %s1908_s28 }
 0x15b   :  { %v313_v57 = vpop.permute.xlu0 %312 }
 0x15c   :  { %v315_v58 = vmul.f32 %v1830_v54, %v313_v57 }
 0x15e   :  { %317 = vrot.lane.b32.xlu1 %v315_v58, %s1908_s28 }
 0x1cc   :  { %v305_v62 = vpop.permute.xlu0 %304 }
 0x1cd   :  { %v307_v63 = vadd.f32 %v305_v62, %v297_v60 }
 0x1cf   :  { %1831 = vtanh.f32 %v307_v63 }
 0x1d0   :  { %v318_v1 = vpop.permute.xlu1 %317 }
 0x1d1   :  { %v320_v2 = vadd.f32 %v318_v1, %v311_v0 }
 0x1d3   :  { %1833 = vtanh.f32 %v320_v2 }
 0x1dc   :  { %v1832_v3 = vpop.eup %1831 }
 0x1dd   :  { %323 = vrot.lane.b32.xlu0 %v1832_v3, %s1908_s28 }
 0x1e0   :  { %v1834_v4 = vpop.eup %1833 }
 0x1e1   :  { %329 = vrot.lane.b32.xlu1 %v1834_v4, %s1908_s28 }
 0x24f   :  { %v324_v5 = vpop.permute.xlu0 %323 }
 0x250   :  { %v326_v6 = vmul.f32 %v1830_v54, %v324_v5 }
 0x252   :  { %334 = vrot.lane.b32.xlu0 %v326_v6, %s1913_s14 }
 0x253   :  { %v330_v7 = vpop.permute.xlu1 %329 }
 0x254   :  { %v332_v8 = vmul.f32 %v1830_v54, %v330_v7 }
 0x256   :  { %340 = vrot.lane.b32.xlu1 %v332_v8, %s1912_s13 }
 0x2c4   :  { %v335_v10 = vpop.permute.xlu0 %334 }
 0x2c5   :  { %338 = vst.msk [vmem:[#allocation3] sm:$0xff] %vm337_vm7, %v335_v10 }
 0x2c8   :  { %v341_v11 = vpop.permute.xlu1 %340 }
 0x2c9   :  { %345 = vst.msk [vmem:[#allocation3 + $0x38] sm:$0xff] %vm344_vm8, %v341_v11  ;;  %v346_v14 = vsel %vm337_vm7, %v335_v10, %v341_v11 }
 0x2ca   :  { %1719 = vmatmul.mubr.msk.f32.vlgmr.msra.gmra.mxu1 %vm57_vm0, %v346_v14 }
 0x2cb   :  { %1733 = vmatpush3.msra.mxu1 %v2007_v9  ;;  %1740 = vmatprep.mubr.msk.f32.mxu1 %vm1909_vm1, %v1907_v12 }
 0x2cc   :  { %1734 = vmatprep.subr.mxu1 %v1907_v12 }
 0x2cd   :  { %1735 = vmatpush3.msra.mxu1 %v2022_v13 }
 0x2ce   :  { %1736 = vmatprep.subr.mxu1 %v1907_v12 }
 0x2cf   :  { %1737 = vmatpush3.msra.mxu1 %v2036_v16 }
 0x2d0   :  { %1738 = vmatprep.subr.mxu1 %v1907_v12 }
 0x2d1   :  { %1739 = vmatpush3.msra.mxu1 %v2046_v17 }
 0x2d2   :  { %1754 = vmatprep.subr.mxu1 %v1907_v12 }
 0x38a   :  { %v421_v15 = vpop.f32.mrf.mxu1 }
 0x38b   :  { %v425_v18 = vadd.f32 %v421_v15, %v351_v47 }
 0x38c   :  { %v1720_v19 = vpop.f32.mrf.mxu1 }
 0x38d   :  { %1835 = vtanh.f32 %v425_v18  ;;  %v1591_v21 = vmul.f32 -1.442695, %v425_v18 }
 0x38f   :  { %1837 = vpow2.f32 %v1591_v21 }
 0x39a   :  { %v1836_v20 = vpop.eup %1835 }
 0x39b   :  { %445 = vrot.lane.b32.xlu1 %v1836_v20, %s1912_s13  ;;  %435 = vrot.lane.b32.xlu0 %v1836_v20, %s1911_s3 }
 0x39c   :  { %v1838_v22 = vpop.eup %1837 }
 0x39d   :  { %v429_v23 = vadd.f32 1.0, %v1838_v22 }
 0x39f   :  { %1839 = vrcp.f32 %v429_v23 }
 0x3ac   :  { %v1840_v26 = vpop.eup %1839 }
 0x3ad   :  { %v444_v37 = vmul.f32 %v1840_v26, %v320_v2  ;;  %v433_v41 = vmul.f32 %v1840_v26, %v307_v63 }
 0x40d   :  { %v446_v27 = vpop.permute.xlu1 %445  ;;  %v436_v30 = vpop.permute.xlu0 %435 }
 0x40e   :  { %v448_v33 = vmul.f32 %v1840_v26, %v446_v27  ;;  %v438_v35 = vmul.f32 %v1840_v26, %v436_v30 }
 0x410   :  { %450 = vrot.lane.b32.xlu1 %v448_v33, %s1908_s28  ;;  %440 = vrot.lane.b32.xlu0 %v438_v35, %s1908_s28 }
 0x482   :  { %v451_v43 = vpop.permute.xlu1 %450  ;;  %v441_v46 = vpop.permute.xlu0 %440 }
 0x483   :  { %v453_v47 = vadd.f32 %v451_v43, %v444_v37  ;;  %v443_v49 = vadd.f32 %v441_v46, %v433_v41 }
 0x485   :  { %1841 = vtanh.f32 %v453_v47 }
 0x486   :  { %1843 = vtanh.f32 %v443_v49 }
 0x492   :  { %v1842_v50 = vpop.eup %1841 }
 0x493   :  { %v1844_v51 = vpop.eup %1843  ;;  %462 = vrot.lane.b32.xlu1 %v1842_v50, %s1908_s28 }
 0x494   :  { %456 = vrot.lane.b32.xlu0 %v1844_v51, %s1908_s28 }
 0x505   :  { %v463_v52 = vpop.permute.xlu1 %462 }
 0x506   :  { %v465_v53 = vmul.f32 %v1840_v26, %v463_v52  ;;  %v457_v54 = vpop.permute.xlu0 %456 }
 0x507   :  { %v459_v55 = vmul.f32 %v1840_v26, %v457_v54 }
 0x508   :  { %473 = vrot.lane.b32.xlu1 %v465_v53, %s1912_s13 }
 0x509   :  { %467 = vrot.lane.b32.xlu0 %v459_v55, %s1913_s14 }
 0x57a   :  { %v474_v56 = vpop.permute.xlu1 %473 }
 0x57b   :  { %477 = vst.msk [vmem:[#allocation3 + $0x30] sm:$0xff] %vm344_vm8, %v474_v56  ;;  %v468_v57 = vpop.permute.xlu0 %467 }
 0x57c   :  { %471 = vst.msk [vmem:[#allocation3 + $0x8] sm:$0xff] %vm337_vm7, %v468_v57  ;;  %v478_v58 = vsel %vm337_vm7, %v468_v57, %v474_v56 }
 0x57d   :  { %1730 = vmatmul.mubr.msk.f32.vlgmr.msra.gmra.mxu0 %vm57_vm0, %v478_v58 }
 0x57e   :  { %1744 = vmatpush3.msra.mxu0 %v2007_v9  ;;  %1751 = vmatprep.mubr.msk.f32.mxu0 %vm1909_vm1, %v1907_v12 }
 0x57f   :  { %1745 = vmatprep.subr.mxu0 %v1907_v12 }
 0x580   :  { %1746 = vmatpush3.msra.mxu0 %v2022_v13 }
 0x581   :  { %1747 = vmatprep.subr.mxu0 %v1907_v12 }
 0x582   :  { %1748 = vmatpush3.msra.mxu0 %v2036_v16 }
 0x583   :  { %1749 = vmatprep.subr.mxu0 %v1907_v12 }
 0x584   :  { %1750 = vmatpush3.msra.mxu0 %v2046_v17 }
 0x585   :  { %1765 = vmatprep.subr.mxu0 %v1907_v12 }
 0x63d   :  { %v553_v59 = vpop.f32.mrf.mxu0 }
 0x63e   :  { %v557_v60 = vadd.f32 %v553_v59, %v483_v44 }
 0x63f   :  { %v1731_v61 = vpop.f32.mrf.mxu0 }
 0x640   :  { %1845 = vtanh.f32 %v557_v60  ;;  %v1593_v63 = vmul.f32 -1.442695, %v557_v60 }
 0x642   :  { %1847 = vpow2.f32 %v1593_v63 }
 0x64d   :  { %v1846_v62 = vpop.eup %1845 }
 0x64e   :  { %577 = vrot.lane.b32.xlu1 %v1846_v62, %s1912_s13  ;;  %567 = vrot.lane.b32.xlu0 %v1846_v62, %s1911_s3 }
 0x64f   :  { %v1848_v0 = vpop.eup %1847 }
 0x650   :  { %v561_v1 = vadd.f32 1.0, %v1848_v0 }
 0x652   :  { %1849 = vrcp.f32 %v561_v1 }
 0x65f   :  { %v1850_v2 = vpop.eup %1849 }
 0x660   :  { %v576_v44 = vmul.f32 %v1850_v2, %v453_v47  ;;  %v565_v7 = vmul.f32 %v1850_v2, %v443_v49 }
 0x6c0   :  { %v578_v3 = vpop.permute.xlu1 %577  ;;  %v568_v4 = vpop.permute.xlu0 %567 }
 0x6c1   :  { %v580_v5 = vmul.f32 %v1850_v2, %v578_v3  ;;  %v570_v6 = vmul.f32 %v1850_v2, %v568_v4 }
 0x6c3   :  { %582 = vrot.lane.b32.xlu1 %v580_v5, %s1908_s28  ;;  %572 = vrot.lane.b32.xlu0 %v570_v6, %s1908_s28 }
 0x735   :  { %v583_v8 = vpop.permute.xlu1 %582  ;;  %v573_v10 = vpop.permute.xlu0 %572 }
 0x736   :  { %v585_v11 = vadd.f32 %v583_v8, %v576_v44  ;;  %v575_v14 = vadd.f32 %v573_v10, %v565_v7 }
 0x738   :  { %1851 = vtanh.f32 %v585_v11 }
 0x739   :  { %1853 = vtanh.f32 %v575_v14 }
 0x745   :  { %v1852_v15 = vpop.eup %1851 }
 0x746   :  { %v1854_v18 = vpop.eup %1853  ;;  %594 = vrot.lane.b32.xlu1 %v1852_v15, %s1908_s28 }
 0x747   :  { %588 = vrot.lane.b32.xlu0 %v1854_v18, %s1908_s28 }
 0x7b8   :  { %v595_v19 = vpop.permute.xlu1 %594 }
 0x7b9   :  { %v597_v20 = vmul.f32 %v1850_v2, %v595_v19  ;;  %v589_v21 = vpop.permute.xlu0 %588 }
 0x7ba   :  { %v591_v22 = vmul.f32 %v1850_v2, %v589_v21 }
 0x7bb   :  { %605 = vrot.lane.b32.xlu1 %v597_v20, %s1912_s13 }
 0x7bc   :  { %599 = vrot.lane.b32.xlu0 %v591_v22, %s1913_s14 }
 0x82d   :  { %v606_v23 = vpop.permute.xlu1 %605 }
 0x82e   :  { %609 = vst.msk [vmem:[#allocation3 + $0x28] sm:$0xff] %vm344_vm8, %v606_v23  ;;  %v600_v26 = vpop.permute.xlu0 %599 }
 0x82f   :  { %603 = vst.msk [vmem:[#allocation3 + $0x10] sm:$0xff] %vm337_vm7, %v600_v26  ;;  %v610_v27 = vsel %vm337_vm7, %v600_v26, %v606_v23 }
 0x830   :  { %1741 = vmatmul.mubr.msk.f32.vlgmr.msra.gmra.mxu1 %vm57_vm0, %v610_v27 }
 0x831   :  { %1755 = vmatpush3.msra.mxu1 %v2007_v9  ;;  %1762 = vmatprep.mubr.msk.f32.mxu1 %vm1909_vm1, %v1907_v12 }
 0x832   :  { %1756 = vmatprep.subr.mxu1 %v1907_v12 }
 0x833   :  { %1757 = vmatpush3.msra.mxu1 %v2022_v13 }
 0x834   :  { %1758 = vmatprep.subr.mxu1 %v1907_v12 }
 0x835   :  { %1759 = vmatpush3.msra.mxu1 %v2036_v16 }
 0x836   :  { %1760 = vmatprep.subr.mxu1 %v1907_v12 }
 0x837   :  { %1761 = vmatpush3.msra.mxu1 %v2046_v17 }
 0x838   :  { %1776 = vmatprep.subr.mxu1 %v1907_v12 }
 0x8f0   :  { %v685_v30 = vpop.f32.mrf.mxu1 }
 0x8f1   :  { %v689_v33 = vadd.f32 %v685_v30, %v615_v38 }
 0x8f2   :  { %v1742_v35 = vpop.f32.mrf.mxu1 }
 0x8f3   :  { %1855 = vtanh.f32 %v689_v33  ;;  %v1595_v41 = vmul.f32 -1.442695, %v689_v33 }
 0x8f5   :  { %1857 = vpow2.f32 %v1595_v41 }
 0x900   :  { %v1856_v37 = vpop.eup %1855 }
 0x901   :  { %709 = vrot.lane.b32.xlu1 %v1856_v37, %s1912_s13  ;;  %699 = vrot.lane.b32.xlu0 %v1856_v37, %s1911_s3 }
 0x902   :  { %v1858_v43 = vpop.eup %1857 }
 0x903   :  { %v693_v46 = vadd.f32 1.0, %v1858_v43 }
 0x905   :  { %1859 = vrcp.f32 %v693_v46 }
 0x912   :  { %v1860_v47 = vpop.eup %1859 }
 0x913   :  { %v708_v38 = vmul.f32 %v1860_v47, %v585_v11  ;;  %v697_v53 = vmul.f32 %v1860_v47, %v575_v14 }
 0x973   :  { %v710_v49 = vpop.permute.xlu1 %709  ;;  %v700_v50 = vpop.permute.xlu0 %699 }
 0x974   :  { %v712_v51 = vmul.f32 %v1860_v47, %v710_v49  ;;  %v702_v52 = vmul.f32 %v1860_v47, %v700_v50 }
 0x976   :  { %714 = vrot.lane.b32.xlu1 %v712_v51, %s1908_s28  ;;  %704 = vrot.lane.b32.xlu0 %v702_v52, %s1908_s28 }
 0x9e8   :  { %v715_v54 = vpop.permute.xlu1 %714  ;;  %v705_v55 = vpop.permute.xlu0 %704 }
 0x9e9   :  { %v717_v56 = vadd.f32 %v715_v54, %v708_v38  ;;  %v707_v57 = vadd.f32 %v705_v55, %v697_v53 }
 0x9eb   :  { %1861 = vtanh.f32 %v717_v56 }
 0x9ec   :  { %1863 = vtanh.f32 %v707_v57 }
 0x9f8   :  { %v1862_v58 = vpop.eup %1861 }
 0x9f9   :  { %v1864_v59 = vpop.eup %1863  ;;  %726 = vrot.lane.b32.xlu1 %v1862_v58, %s1908_s28 }
 0x9fa   :  { %720 = vrot.lane.b32.xlu0 %v1864_v59, %s1908_s28 }
 0xa6b   :  { %v727_v60 = vpop.permute.xlu1 %726 }
 0xa6c   :  { %v729_v61 = vmul.f32 %v1860_v47, %v727_v60  ;;  %v721_v62 = vpop.permute.xlu0 %720 }
 0xa6d   :  { %v723_v63 = vmul.f32 %v1860_v47, %v721_v62 }
 0xa6e   :  { %737 = vrot.lane.b32.xlu1 %v729_v61, %s1912_s13 }
 0xa6f   :  { %731 = vrot.lane.b32.xlu0 %v723_v63, %s1913_s14 }
 0xae0   :  { %v738_v0 = vpop.permute.xlu1 %737 }
 0xae1   :  { %741 = vst.msk [vmem:[#allocation3 + $0x20] sm:$0xff] %vm344_vm8, %v738_v0  ;;  %v732_v1 = vpop.permute.xlu0 %731 }
 0xae2   :  { %735 = vst.msk [vmem:[#allocation3 + $0x18] sm:$0xff] %vm337_vm7, %v732_v1  ;;  %v742_v2 = vsel %vm337_vm7, %v732_v1, %v738_v0 }
 0xae3   :  { %1752 = vmatmul.mubr.msk.f32.vlgmr.msra.gmra.mxu0 %vm57_vm0, %v742_v2 }
 0xae4   :  { %1766 = vmatpush3.msra.mxu0 %v2007_v9  ;;  %1773 = vmatprep.mubr.msk.f32.mxu0 %vm1909_vm1, %v1907_v12 }
 0xae5   :  { %1767 = vmatprep.subr.mxu0 %v1907_v12 }
 0xae6   :  { %1768 = vmatpush3.msra.mxu0 %v2022_v13 }
 0xae7   :  { %1769 = vmatprep.subr.mxu0 %v1907_v12 }
 0xae8   :  { %1770 = vmatpush3.msra.mxu0 %v2036_v16 }
 0xae9   :  { %1771 = vmatprep.subr.mxu0 %v1907_v12 }
 0xaea   :  { %1772 = vmatpush3.msra.mxu0 %v2046_v17 }
 0xba3   :  { %v815_v3 = vpop.f32.mrf.mxu0 }
 0xba4   :  { %v819_v4 = vadd.f32 %v815_v3, %v745_v39 }
 0xba5   :  { %v1753_v5 = vpop.f32.mrf.mxu0 }
 0xba6   :  { %1865 = vtanh.f32 %v819_v4  ;;  %v1597_v44 = vmul.f32 -1.442695, %v819_v4 }
 0xba8   :  { %1867 = vpow2.f32 %v1597_v44 }
 0xbb3   :  { %v1866_v6 = vpop.eup %1865 }
 0xbb4   :  { %839 = vrot.lane.b32.xlu1 %v1866_v6, %s1912_s13  ;;  %829 = vrot.lane.b32.xlu0 %v1866_v6, %s1911_s3 }
 0xbb5   :  { %v1868_v7 = vpop.eup %1867 }
 0xbb6   :  { %v823_v8 = vadd.f32 1.0, %v1868_v7 }
 0xbb8   :  { %1869 = vrcp.f32 %v823_v8 }
 0xbc5   :  { %v1870_v10 = vpop.eup %1869 }
 0xbc6   :  { %v838_v28 = vmul.f32 %v1870_v10, %v717_v56  ;;  %v827_v32 = vmul.f32 %v1870_v10, %v707_v57 }
 0xc26   :  { %v840_v11 = vpop.permute.xlu1 %839  ;;  %v830_v14 = vpop.permute.xlu0 %829 }
 0xc27   :  { %v842_v15 = vmul.f32 %v1870_v10, %v840_v11  ;;  %v832_v18 = vmul.f32 %v1870_v10, %v830_v14 }
 0xc29   :  { %844 = vrot.lane.b32.xlu1 %v842_v15, %s1908_s28  ;;  %834 = vrot.lane.b32.xlu0 %v832_v18, %s1908_s28 }
 0xc9b   :  { %v845_v39 = vpop.permute.xlu1 %844  ;;  %v835_v19 = vpop.permute.xlu0 %834 }
 0xc9c   :  { %v847_v20 = vadd.f32 %v845_v39, %v838_v28  ;;  %v837_v21 = vadd.f32 %v835_v19, %v827_v32 }
 0xc9e   :  { %1871 = vtanh.f32 %v847_v20 }
 0xc9f   :  { %1873 = vtanh.f32 %v837_v21 }
 0xcab   :  { %v1872_v22 = vpop.eup %1871 }
 0xcac   :  { %v1874_v23 = vpop.eup %1873  ;;  %856 = vrot.lane.b32.xlu1 %v1872_v22, %s1908_s28 }
 0xcad   :  { %850 = vrot.lane.b32.xlu0 %v1874_v23, %s1908_s28 }
 0xd1e   :  { %v857_v26 = vpop.permute.xlu1 %856 }
 0xd1f   :  { %v859_v27 = vmul.f32 %v1870_v10, %v857_v26  ;;  %v851_v30 = vpop.permute.xlu0 %850 }
 0xd20   :  { %v853_v33 = vmul.f32 %v1870_v10, %v851_v30 }
 0xd21   :  { %866 = vrot.lane.b32.xlu1 %v859_v27, %s1912_s13 }
 0xd22   :  { %861 = vrot.lane.b32.xlu0 %v853_v33, %s1913_s14 }
 0xd93   :  { %v867_v35 = vpop.permute.xlu1 %866 }
 0xd94   :  { %869 = vst.msk [vmem:[#allocation3 + $0x18] sm:$0xff] %vm344_vm8, %v867_v35  ;;  %v862_v37 = vpop.permute.xlu0 %861 }
 0xd95   :  { %864 = vst.msk [vmem:[#allocation3 + $0x20] sm:$0xff] %vm337_vm7, %v862_v37  ;;  %v870_v41 = vsel %vm337_vm7, %v862_v37, %v867_v35 }
 0xd96   :  { %1763 = vmatmul.mubr.msk.f32.vlgmr.msra.gmra.mxu1 %vm57_vm0, %v870_v41 }
 0xd97   :  { %1777 = vmatpush3.msra.mxu1 %v2007_v9  ;;  %1784 = vmatprep.mubr.msk.f32.mxu1 %vm1909_vm1, %v1907_v12 }
 0xd98   :  { %1778 = vmatprep.subr.mxu1 %v1907_v12 }
 0xd99   :  { %1779 = vmatpush3.msra.mxu1 %v2022_v13 }
 0xd9a   :  { %1780 = vmatprep.subr.mxu1 %v1907_v12 }
 0xd9b   :  { %1781 = vmatpush3.msra.mxu1 %v2036_v16 }
 0xd9c   :  { %1782 = vmatprep.subr.mxu1 %v1907_v12 }
 0xd9d   :  { %1783 = vmatpush3.msra.mxu1 %v2046_v17 }
 0xe56   :  { %v943_v43 = vpop.f32.mrf.mxu1 }
 0xe57   :  { %v947_v9 = vadd.f32 %v943_v43, %v873_v45 }
 0xe58   :  { %v1764_v46 = vpop.f32.mrf.mxu1 }
 0xe59   :  { %1875 = vtanh.f32 %v947_v9  ;;  %v1599_v13 = vmul.f32 -1.442695, %v947_v9 }
 0xe5b   :  { %1877 = vpow2.f32 %v1599_v13 }
 0xe66   :  { %v1876_v47 = vpop.eup %1875 }
 0xe67   :  { %967 = vrot.lane.b32.xlu1 %v1876_v47, %s1912_s13  ;;  %957 = vrot.lane.b32.xlu0 %v1876_v47, %s1911_s3 }
 0xe68   :  { %v1878_v16 = vpop.eup %1877 }
 0xe69   :  { %v951_v12 = vadd.f32 1.0, %v1878_v16 }
 0xe6b   :  { %1879 = vrcp.f32 %v951_v12 }
 0xe78   :  { %v1880_v17 = vpop.eup %1879 }
 0xe79   :  { %v966_v25 = vmul.f32 %v1880_v17, %v847_v20  ;;  %v955_v36 = vmul.f32 %v1880_v17, %v837_v21 }
 0xed9   :  { %v968_v49 = vpop.permute.xlu1 %967  ;;  %v958_v50 = vpop.permute.xlu0 %957 }
 0xeda   :  { %v970_v51 = vmul.f32 %v1880_v17, %v968_v49  ;;  %v960_v52 = vmul.f32 %v1880_v17, %v958_v50 }
 0xedc   :  { %972 = vrot.lane.b32.xlu1 %v970_v51, %s1908_s28  ;;  %962 = vrot.lane.b32.xlu0 %v960_v52, %s1908_s28  ;;  %v1265_v51 = vld [vmem:[%s2417_s6 + $0x18] sm:$0xff]  ;;  %v1264_v52 = vld [vmem:[%s2417_s6 + $0x10] sm:$0xff] }
 0xedd   :  { %1787 = vmatprep.subr.mxu0 %v1265_v51 }
 0xf4e   :  { %v973_v45 = vpop.permute.xlu1 %972  ;;  %v963_v38 = vpop.permute.xlu0 %962 }
 0xf4f   :  { %v975_v53 = vadd.f32 %v973_v45, %v966_v25  ;;  %v965_v54 = vadd.f32 %v963_v38, %v955_v36  ;;  %v1263_v25 = vld [vmem:[%s2417_s6 + $0x8] sm:$0xff]  ;;  %v1262_v36 = vld [vmem:[%s2417_s6] sm:$0xff] }
 0xf51   :  { %1881 = vtanh.f32 %v975_v53 }
 0xf52   :  { %1883 = vtanh.f32 %v965_v54 }
 0xf5e   :  { %v1882_v55 = vpop.eup %1881 }
 0xf5f   :  { %v1884_v56 = vpop.eup %1883  ;;  %984 = vrot.lane.b32.xlu1 %v1882_v55, %s1908_s28  ;;  %v1914_v55 = vmov 0  }
 0xf60   :  { %978 = vrot.lane.b32.xlu0 %v1884_v56, %s1908_s28  ;;  %1824 = vset.pattern.permute.xlu1 %v1914_v55  ;;  %v1403_v56 = vld [vmem:[%s2418_s10 + $0x8] sm:$0xff] }
 0xf61   :  { %1823 = vset.pattern.permute.xlu0 %v1914_v55 }
 0xfd1   :  { %v985_v57 = vpop.permute.xlu1 %984 }
 0xfd2   :  { %v987_v58 = vmul.f32 %v1880_v17, %v985_v57  ;;  %v979_v59 = vpop.permute.xlu0 %978  ;;  %v1402_v57 = vld [vmem:[%s2418_s10] sm:$0xff] }
 0xfd3   :  { %v981_v60 = vmul.f32 %v1880_v17, %v979_v59  ;;  %v1405_v59 = vld [vmem:[%s2418_s10 + $0x18] sm:$0xff] }
 0xfd4   :  { %994 = vrot.lane.b32.xlu1 %v987_v58, %s1912_s13  ;;  %v1404_v58 = vld [vmem:[%s2418_s10 + $0x10] sm:$0xff] }
 0xfd5   :  { %989 = vrot.lane.b32.xlu0 %v981_v60, %s1913_s14  ;;  %v1406_v60 = vld [vmem:[%s2418_s10 + $0x20] sm:$0xff] }
0x1046   :  { %v995_v61 = vpop.permute.xlu1 %994 }
0x1047   :  { %997 = vst.msk [vmem:[#allocation3 + $0x10] sm:$0xff] %vm344_vm8, %v995_v61  ;;  %v990_v62 = vpop.permute.xlu0 %989 }
0x1048   :  { %992 = vst.msk [vmem:[#allocation3 + $0x28] sm:$0xff] %vm337_vm7, %v990_v62  ;;  %v998_v63 = vsel %vm337_vm7, %v990_v62, %v995_v61  ;;  %v1407_v61 = vld [vmem:[%s2418_s10 + $0x28] sm:$0xff]  ;;  %v1408_v62 = vld [vmem:[%s2418_s10 + $0x30] sm:$0xff] }
0x1049   :  { %1774 = vmatmul.mubr.msk.f32.vlgmr.msra.gmra.mxu0 %vm57_vm0, %v998_v63  ;;  %v1409_v63 = vld [vmem:[%s2418_s10 + $0x38] sm:$0xff] }
0x104a   :  { %1788 = vmatpush3.msra.mxu0 %v1265_v51 }
0x104b   :  { %1789 = vmatprep.subr.mxu0 %v1264_v52 }
0x104c   :  { %1790 = vmatpush3.msra.mxu0 %v1264_v52 }
0x104d   :  { %1791 = vmatprep.subr.mxu0 %v1263_v25 }
0x104e   :  { %1792 = vmatpush3.msra.mxu0 %v1263_v25 }
0x104f   :  { %1793 = vmatprep.subr.mxu0 %v1262_v36 }
0x1050   :  { %1794 = vmatpush3.msra.mxu0 %v1262_v36 }
0x1109   :  { %v1071_v0 = vpop.f32.mrf.mxu0 }
0x110a   :  { %v1075_v1 = vadd.f32 %v1071_v0, %v1001_v48 }
0x110b   :  { %v1775_v2 = vpop.f32.mrf.mxu0 }
0x110c   :  { %1885 = vtanh.f32 %v1075_v1  ;;  %v1601_v4 = vmul.f32 -1.442695, %v1075_v1 }
0x110e   :  { %1887 = vpow2.f32 %v1601_v4  ;;  %v1256_v4 = vld [vmem:[#allocation3 + $0x10] sm:$0xff] }
0x1119   :  { %v1886_v3 = vpop.eup %1885 }
0x111a   :  { %1095 = vrot.lane.b32.xlu1 %v1886_v3, %s1912_s13  ;;  %1085 = vrot.lane.b32.xlu0 %v1886_v3, %s1911_s3 }
0x111b   :  { %v1888_v5 = vpop.eup %1887 }
0x111c   :  { %v1079_v6 = vadd.f32 1.0, %v1888_v5  ;;  %v1257_v5 = vld [vmem:[#allocation3 + $0x18] sm:$0xff] }
0x111e   :  { %1889 = vrcp.f32 %v1079_v6  ;;  %v1258_v6 = vld [vmem:[#allocation3 + $0x20] sm:$0xff] }
0x112b   :  { %v1890_v44 = vpop.eup %1889 }
0x112c   :  { %v1094_v24 = vmul.f32 %v1890_v44, %v975_v53  ;;  %v1083_v40 = vmul.f32 %v1890_v44, %v965_v54 }
0x118c   :  { %v1096_v7 = vpop.permute.xlu1 %1095  ;;  %v1086_v8 = vpop.permute.xlu0 %1085 }
0x118d   :  { %v1098_v10 = vmul.f32 %v1890_v44, %v1096_v7  ;;  %v1088_v11 = vmul.f32 %v1890_v44, %v1086_v8 }
0x118f   :  { %1100 = vrot.lane.b32.xlu1 %v1098_v10, %s1908_s28  ;;  %1090 = vrot.lane.b32.xlu0 %v1088_v11, %s1908_s28 }
0x1201   :  { %v1101_v48 = vpop.permute.xlu1 %1100  ;;  %v1091_v14 = vpop.permute.xlu0 %1090 }
0x1202   :  { %v1103_v15 = vadd.f32 %v1101_v48, %v1094_v24  ;;  %v1093_v18 = vadd.f32 %v1091_v14, %v1083_v40  ;;  %v1604_v24 = vld [vmem:[%s2419_s7] ss:$0 sm:$0xff] }
0x1204   :  { %1891 = vtanh.f32 %v1103_v15 }
0x1205   :  { %1893 = vtanh.f32 %v1093_v18 }
0x1211   :  { %v1892_v28 = vpop.eup %1891 }
0x1212   :  { %v1894_v32 = vpop.eup %1893  ;;  %1112 = vrot.lane.b32.xlu1 %v1892_v28, %s1908_s28 }
0x1213   :  { %1106 = vrot.lane.b32.xlu0 %v1894_v32, %s1908_s28 }
0x1284   :  { %v1113_v39 = vpop.permute.xlu1 %1112 }
0x1285   :  { %v1115_v19 = vmul.f32 %v1890_v44, %v1113_v39  ;;  %v1107_v20 = vpop.permute.xlu0 %1106 }
0x1286   :  { %v1109_v21 = vmul.f32 %v1890_v44, %v1107_v20  ;;  %v1259_v44 = vld [vmem:[#allocation3 + $0x28] sm:$0xff] }
0x1287   :  { %1122 = vrot.lane.b32.xlu1 %v1115_v19, %s1912_s13 }
0x1288   :  { %1117 = vrot.lane.b32.xlu0 %v1109_v21, %s1913_s14 }
0x12f9   :  { %v1123_v22 = vpop.permute.xlu1 %1122 }
0x12fa   :  { %1125 = vst.msk [vmem:[#allocation3 + $0x8] sm:$0xff] %vm344_vm8, %v1123_v22  ;;  %v1118_v23 = vpop.permute.xlu0 %1117 }
0x12fb   :  { %1120 = vst.msk [vmem:[#allocation3 + $0x30] sm:$0xff] %vm337_vm7, %v1118_v23  ;;  %v1126_v26 = vsel %vm337_vm7, %v1118_v23, %v1123_v22 }
0x12fc   :  { %1785 = vmatmul.mubr.msk.f32.vlgmr.msra.gmra.mxu1 %vm57_vm0, %v1126_v26 }
0x1301   :  { %v1255_v3 = vld [vmem:[#allocation3 + $0x8] sm:$0xff] }
0x1302   :  { %v1260_v7 = vld [vmem:[#allocation3 + $0x30] sm:$0xff] }
0x13bc   :  { %v1199_v27 = vpop.f32.mrf.mxu1 }
0x13bd   :  { %v1203_v30 = vadd.f32 %v1199_v27, %v1129_v42 }
0x13be   :  { %v1786_v33 = vpop.f32.mrf.mxu1 }
0x13bf   :  { %1895 = vtanh.f32 %v1203_v30  ;;  %v1603_v37 = vmul.f32 -1.442695, %v1203_v30 }
0x13c1   :  { %1897 = vpow2.f32 %v1603_v37 }
0x13cc   :  { %v1896_v35 = vpop.eup %1895 }
0x13cd   :  { %1213 = vrot.lane.b32.xlu1 %v1896_v35, %s1911_s3  ;;  %1223 = vrot.lane.b32.xlu0 %v1896_v35, %s1912_s13 }
0x13ce   :  { %v1898_v41 = vpop.eup %1897 }
0x13cf   :  { %v1207_v43 = vadd.f32 1.0, %v1898_v41 }
0x13d1   :  { %1899 = vrcp.f32 %v1207_v43 }
0x13de   :  { %v1900_v9 = vpop.eup %1899 }
0x13df   :  { %v1222_v29 = vmul.f32 %v1900_v9, %v1103_v15  ;;  %v1211_v34 = vmul.f32 %v1900_v9, %v1093_v18 }
0x143f   :  { %v1214_v46 = vpop.permute.xlu1 %1213  ;;  %v1224_v47 = vpop.permute.xlu0 %1223 }
0x1440   :  { %v1216_v31 = vmul.f32 %v1900_v9, %v1214_v46  ;;  %v1226_v13 = vmul.f32 %v1900_v9, %v1224_v47 }
0x1442   :  { %1228 = vrot.lane.b32.xlu0 %v1226_v13, %s1908_s28  ;;  %1218 = vrot.lane.b32.xlu1 %v1216_v31, %s1908_s28 }
0x14b4   :  { %v1229_v42 = vpop.permute.xlu0 %1228  ;;  %v1219_v16 = vpop.permute.xlu1 %1218 }
0x14b5   :  { %v1231_v12 = vadd.f32 %v1229_v42, %v1222_v29  ;;  %v1221_v17 = vadd.f32 %v1219_v16, %v1211_v34 }
0x14b7   :  { %1901 = vtanh.f32 %v1231_v12 }
0x14b8   :  { %1903 = vtanh.f32 %v1221_v17 }
0x14c4   :  { %v1902_v49 = vpop.eup %1901 }
0x14c5   :  { %v1904_v50 = vpop.eup %1903  ;;  %1240 = vrot.lane.b32.xlu0 %v1902_v49, %s1908_s28 }
0x14c6   :  { %1234 = vrot.lane.b32.xlu1 %v1904_v50, %s1908_s28 }
0x1537   :  { %v1241_v45 = vpop.permute.xlu0 %1240 }
0x1538   :  { %v1243_v38 = vmul.f32 %v1900_v9, %v1241_v45  ;;  %v1235_v53 = vpop.permute.xlu1 %1234 }
0x1539   :  { %v1237_v54 = vmul.f32 %v1900_v9, %v1235_v53 }
0x153a   :  { %1250 = vrot.lane.b32.xlu0 %v1243_v38, %s1912_s13 }
0x153b   :  { %1245 = vrot.lane.b32.xlu1 %v1237_v54, %s1913_s14 }
0x153e   :  { %1412 = vperm.xlu0 %1823, %v1402_v57  }
0x153f   :  { %1417 = vperm.xlu1 %1824, %v1403_v56  }
0x1542   :  { %1427 = vperm.xlu0 %1823, %v1405_v59  }
0x1543   :  { %1422 = vperm.xlu1 %1824, %v1404_v58  }
0x1546   :  { %1437 = vperm.xlu0 %1823, %v1407_v61  }
0x1547   :  { %1432 = vperm.xlu1 %1824, %v1406_v60  }
0x154a   :  { %1447 = vperm.xlu0 %1823, %v1409_v63  }
0x154b   :  { %1442 = vperm.xlu1 %1824, %v1408_v62  }
0x15ac   :  { %v1251_v0 = vpop.permute.xlu0 %1250 }
0x15ad   :  { %1253 = vst.msk [vmem:[#allocation3] sm:$0xff] %vm344_vm8, %v1251_v0  ;;  %v1246_v1 = vpop.permute.xlu1 %1245 }
0x15ae   :  { %1248 = vst.msk [vmem:[#allocation3 + $0x38] sm:$0xff] %vm337_vm7, %v1246_v1 }
0x15b4   :  { %v1254_v2 = vld [vmem:[#allocation3] sm:$0xff] }
0x15b5   :  { %1795 = vmatprep.mubr.msk.f32.mxu0 %vm57_vm0, %v1254_v2  ;;  %v1261_v8 = vld [vmem:[#allocation3 + $0x38] sm:$0xff] }
0x15b6   :  { %1796 = vmatmul.mubr.msk.f32.vlgmr.msra.gmra.mxu0 %vm57_vm0, %v1255_v3 }
0x15b7   :  { %1798 = vmatprep.mubr.msk.f32.mxu0 %vm57_vm0, %v1256_v4 }
0x15b9   :  { %v1413_v11 = vpop.permute.xlu0 %1412 }
0x15ba   :  { %1799 = vmatmul.mubr.msk.f32.gmra.mxu0 %vm57_vm0, %v1257_v5  ;;  %v2350_v10 = vpop.permute.xlu1 %1417 }
0x15bb   :  { %1801 = vmatprep.mubr.msk.f32.mxu0 %vm57_vm0, %v1258_v6 }
0x15bd   :  { %v1428_v28 = vpop.permute.xlu0 %1427 }
0x15be   :  { %1802 = vmatmul.mubr.msk.f32.gmra.mxu0 %vm57_vm0, %v1259_v44  ;;  %v1423_v15 = vpop.permute.xlu1 %1422 }
0x15bf   :  { %1804 = vmatprep.mubr.msk.f32.mxu0 %vm57_vm0, %v1260_v7 }
0x15c1   :  { %v1438_v43 = vpop.permute.xlu0 %1437 }
0x15c2   :  { %1805 = vmatmul.mubr.msk.f32.gmra.mxu0 %vm57_vm0, %v1261_v8  ;;  %v1433_v30 = vpop.permute.xlu1 %1432 }
0x15c5   :  { %v1448_v52 = vpop.permute.xlu0 %1447 }
0x15c6   :  { %v1443_v51 = vpop.permute.xlu1 %1442 }
0x1676   :  { %v1797_v40 = vpop.f32.mrf.mxu0 }
0x1677   :  { %v1369_v48 = vadd.f32 %v1797_v40, %v1604_v24 }
0x1678   :  { %v1363_v14 = vpop.f32.mrf.mxu0 }
0x1679   :  { %v1364_v18 = vadd.f32 %v1604_v24, %v1363_v14  ;;  %v1451_v39 = vmul.f32 %v2350_v10, %v1369_v48 }
0x167a   :  { %v1800_v32 = vpop.f32.mrf.mxu0 }
0x167b   :  { %v1450_v19 = vmul.f32 %v1413_v11, %v1364_v18  ;;  %v1379_v20 = vadd.f32 %v1800_v32, %v1604_v24  ;;  %v1460_v27 = vsel %vm1458_vm9, %v1451_v39, 0.0 }
0x167c   :  { %v1373_v21 = vpop.f32.mrf.mxu0 }
0x167d   :  { %v1459_v22 = vsel %vm1458_vm9, %v1450_v19, 0.0  ;;  %v1374_v23 = vadd.f32 %v1604_v24, %v1373_v21  ;;  %v1453_v33 = vmul.f32 %v1428_v28, %v1379_v20 }
0x167e   :  { %v1803_v26 = vpop.f32.mrf.mxu0  ;;  %v1461_v41 = vadd.f32 %v1460_v27, %v1459_v22 }
0x167f   :  { %v1452_v35 = vmul.f32 %v1423_v15, %v1374_v23  ;;  %v1389_v37 = vadd.f32 %v1803_v26, %v1604_v24  ;;  %v1464_v29 = vsel %vm1458_vm9, %v1453_v33, 0.0 }
0x1680   :  { %v1383_v9 = vpop.f32.mrf.mxu0 }
0x1681   :  { %v1462_v46 = vsel %vm1458_vm9, %v1452_v35, 0.0  ;;  %v1384_v47 = vadd.f32 %v1604_v24, %v1383_v9  ;;  %v1455_v34 = vmul.f32 %v1438_v43, %v1389_v37 }
0x1682   :  { %v1463_v31 = vadd.f32 %v1462_v46, %v1461_v41  ;;  %v1806_v13 = vpop.f32.mrf.mxu0 }
0x1683   :  { %v1454_v42 = vmul.f32 %v1433_v30, %v1384_v47  ;;  %v1399_v16 = vadd.f32 %v1806_v13, %v1604_v24  ;;  %v1468_v36 = vsel %vm1458_vm9, %v1455_v34, 0.0 }
0x1684   :  { %v1465_v12 = vadd.f32 %v1464_v29, %v1463_v31  ;;  %v1393_v17 = vpop.f32.mrf.mxu0 }
0x1685   :  { %v1466_v49 = vsel %vm1458_vm9, %v1454_v42, 0.0  ;;  %v1394_v50 = vadd.f32 %v1604_v24, %v1393_v17  ;;  %v1457_v45 = vmul.f32 %v1448_v52, %v1399_v16 }
0x1686   :  { %v1467_v25 = vadd.f32 %v1466_v49, %v1465_v12 }
0x1687   :  { %v1456_v38 = vmul.f32 %v1443_v51, %v1394_v50  ;;  %v1472_v56 = vsel %vm1458_vm9, %v1457_v45, 0.0 }
0x1688   :  { %v1469_v53 = vadd.f32 %v1468_v36, %v1467_v25  ;;  %v1613_v25 = vld [vmem:[%s2420_s8] ss:$0 sm:$0xff] }
0x1689   :  { %v1470_v54 = vsel %vm1458_vm9, %v1456_v38, 0.0 }
0x168a   :  { %v1471_v55 = vadd.f32 %v1470_v54, %v1469_v53 }
0x168c   :  { %v1473_v57 = vadd.f32 %v1472_v56, %v1471_v55 }
0x168e   :  { %v1474_v58 = vrot.slane %v1473_v57, 4 }
0x1690   :  { %v1475_v59 = vadd.f32 %v1474_v58, %v1473_v57  ;;  %v1614_v58 = vld [vmem:[%s2421_s9] ss:$0 sm:$0xff] }
0x1692   :  { %v1476_v60 = vrot.slane %v1475_v59, 2 }
0x1694   :  { %v1477_v61 = vadd.f32 %v1476_v60, %v1475_v59 }
0x1696   :  { %v1478_v62 = vrot.slane %v1477_v61, 1 }
0x1698   :  { %v1479_v63 = vadd.f32 %v1478_v62, %v1477_v61 }
0x169a   :  { %v1480_v0 = vmul.f32 0.0625, %v1479_v63 }
0x169c   :  { %v1481_v1 = vsub.f32 %v1364_v18, %v1480_v0  ;;  %v1482_v2 = vsub.f32 %v1369_v48, %v1480_v0  ;;  %v1483_v3 = vsub.f32 %v1374_v23, %v1480_v0  ;;  %v1484_v4 = vsub.f32 %v1379_v20, %v1480_v0 }
0x169d   :  { %v1485_v5 = vsub.f32 %v1384_v47, %v1480_v0  ;;  %v1486_v6 = vsub.f32 %v1389_v37, %v1480_v0  ;;  %v1487_v40 = vsub.f32 %v1394_v50, %v1480_v0  ;;  %v1488_v21 = vsub.f32 %v1399_v16, %v1480_v0 }
0x169e   :  { %v1489_v44 = vmul.f32 %v1481_v1, %v1413_v11  ;;  %v1490_v7 = vmul.f32 %v1482_v2, %v2350_v10  ;;  %v1491_v8 = vmul.f32 %v1483_v3, %v1423_v15  ;;  %v1492_v24 = vmul.f32 %v1484_v4, %v1428_v28 }
0x169f   :  { %v1493_v14 = vmul.f32 %v1485_v5, %v1433_v30  ;;  %v1494_v22 = vmul.f32 %v1486_v6, %v1438_v43  ;;  %v1495_v23 = vmul.f32 %v1487_v40, %v1443_v51  ;;  %v1496_v15 = vmul.f32 %v1488_v21, %v1448_v52 }
0x16a0   :  { %v1497_v32 = vmul.f32 %v1489_v44, %v1489_v44  ;;  %v1498_v39 = vmul.f32 %v1490_v7, %v1490_v7  ;;  %v1499_v19 = vmul.f32 %v1491_v8, %v1491_v8  ;;  %v1500_v26 = vmul.f32 %v1492_v24, %v1492_v24 }
0x16a1   :  { %v1501_v27 = vmul.f32 %v1493_v14, %v1493_v14  ;;  %v1502_v28 = vmul.f32 %v1494_v22, %v1494_v22  ;;  %v1503_v35 = vmul.f32 %v1495_v23, %v1495_v23  ;;  %v1504_v43 = vmul.f32 %v1496_v15, %v1496_v15 }
0x16a2   :  { %v1505_v18 = vsel %vm1458_vm9, %v1497_v32, 0.0  ;;  %v1506_v48 = vsel %vm1458_vm9, %v1498_v39, 0.0  ;;  %v1508_v11 = vsel %vm1458_vm9, %v1499_v19, 0.0  ;;  %v1510_v30 = vsel %vm1458_vm9, %v1500_v26, 0.0 }
0x16a3   :  { %v1507_v20 = vadd.f32 %v1506_v48, %v1505_v18  ;;  %v1512_v37 = vsel %vm1458_vm9, %v1501_v27, 0.0  ;;  %v1514_v9 = vsel %vm1458_vm9, %v1502_v28, 0.0  ;;  %v1516_v47 = vsel %vm1458_vm9, %v1503_v35, 0.0 }
0x16a4   :  { %v1518_v13 = vsel %vm1458_vm9, %v1504_v43, 0.0 }
0x16a5   :  { %v1509_v10 = vadd.f32 %v1508_v11, %v1507_v20 }
0x16a7   :  { %v1511_v33 = vadd.f32 %v1510_v30, %v1509_v10 }
0x16a9   :  { %v1513_v41 = vadd.f32 %v1512_v37, %v1511_v33 }
0x16ab   :  { %v1515_v46 = vadd.f32 %v1514_v9, %v1513_v41 }
0x16ad   :  { %v1517_v31 = vadd.f32 %v1516_v47, %v1515_v46 }
0x16af   :  { %v1519_v29 = vadd.f32 %v1518_v13, %v1517_v31 }
0x16b1   :  { %v1520_v34 = vrot.slane %v1519_v29, 4 }
0x16b3   :  { %v1521_v42 = vadd.f32 %v1520_v34, %v1519_v29 }
0x16b5   :  { %v1522_v16 = vrot.slane %v1521_v42, 2 }
0x16b7   :  { %v1523_v12 = vadd.f32 %v1522_v16, %v1521_v42 }
0x16b9   :  { %v1524_v17 = vrot.slane %v1523_v12, 1 }
0x16bb   :  { %v1525_v49 = vadd.f32 %v1524_v17, %v1523_v12 }
0x16bd   :  { %v1526_v50 = vmul.f32 0.0625, %v1525_v49 }
0x16bf   :  { %v1527_v51 = vadd.f32 1e-05, %v1526_v50 }
0x16c1   :  { %1905 = vrsqrt.f32 %v1527_v51 }
0x16ce   :  { %v1906_v52 = vpop.eup %1905 }
0x16cf   :  { %v1529_v36 = vmul.f32 %v1906_v52, %v1481_v1  ;;  %v1530_v45 = vmul.f32 %v1906_v52, %v1482_v2  ;;  %v1531_v38 = vmul.f32 %v1906_v52, %v1483_v3  ;;  %v1532_v53 = vmul.f32 %v1906_v52, %v1484_v4 }
0x16d0   :  { %v1533_v54 = vmul.f32 %v1906_v52, %v1485_v5  ;;  %v1534_v55 = vmul.f32 %v1906_v52, %v1486_v6  ;;  %v1535_v56 = vmul.f32 %v1906_v52, %v1487_v40  ;;  %v1536_v57 = vmul.f32 %v1906_v52, %v1488_v21 }
0x16d1   :  { %v1544_v59 = vmul.f32 %v1613_v25, %v1529_v36  ;;  %v1545_v60 = vmul.f32 %v1613_v25, %v1530_v45  ;;  %v1546_v61 = vmul.f32 %v1613_v25, %v1531_v38  ;;  %v1547_v62 = vmul.f32 %v1613_v25, %v1532_v53 }
0x16d2   :  { %v1548_v63 = vmul.f32 %v1613_v25, %v1533_v54  ;;  %v1549_v0 = vmul.f32 %v1613_v25, %v1534_v55  ;;  %v1550_v44 = vmul.f32 %v1613_v25, %v1535_v56  ;;  %v1551_v7 = vmul.f32 %v1613_v25, %v1536_v57 }
0x16d3   :  { %v1559_v1 = vadd.f32 %v1614_v58, %v1544_v59  ;;  %v1560_v2 = vadd.f32 %v1614_v58, %v1545_v60  ;;  %v1561_v3 = vadd.f32 %v1614_v58, %v1546_v61  ;;  %v1562_v4 = vadd.f32 %v1614_v58, %v1547_v62 }
0x16d4   :  { %v1563_v5 = vadd.f32 %v1614_v58, %v1548_v63  ;;  %v1564_v6 = vadd.f32 %v1614_v58, %v1549_v0  ;;  %v1565_v8 = vadd.f32 %v1614_v58, %v1550_v44  ;;  %v1566_v24 = vadd.f32 %v1614_v58, %v1551_v7 }
0x16d5   :  { %1567 = vst.msk [vmem:[%s2422_s11] sm:$0xff] %vm1458_vm9, %v1559_v1  ;;  %1568 = vst.msk [vmem:[%s2422_s11 + $0x8] sm:$0xff] %vm1458_vm9, %v1560_v2 }
0x16d6   :  { %1569 = vst.msk [vmem:[%s2422_s11 + $0x10] sm:$0xff] %vm1458_vm9, %v1561_v3  ;;  %1570 = vst.msk [vmem:[%s2422_s11 + $0x18] sm:$0xff] %vm1458_vm9, %v1562_v4 }
0x16d7   :  { %1571 = vst.msk [vmem:[%s2422_s11 + $0x20] sm:$0xff] %vm1458_vm9, %v1563_v5  ;;  %1572 = vst.msk [vmem:[%s2422_s11 + $0x28] sm:$0xff] %vm1458_vm9, %v1564_v6 }
0x16d8   :  { %1573 = vst.msk [vmem:[%s2422_s11 + $0x30] sm:$0xff] %vm1458_vm9, %v1565_v8  ;;  %1574 = vst.msk [vmem:[%s2422_s11 + $0x38] sm:$0xff] %vm1458_vm9, %v1566_v24 }

</bundles_post_ra>
